<compile_context>
chip_gen: v6e
topology: v6e:2x2x1
jax: 0.10.0
libtpu: 0.0.40
codegen_flags: <defaults>
</compile_context>

<pallas_src>
import functools
import math

import jax
import jax.numpy as jnp
from jax import lax
from jax.experimental import pallas as pl
from jax.experimental.pallas import tpu as pltpu

LAMBDA = 0.5   # nn.Softshrink() default lambda
LANES = 128    # TPU vreg lane width


def _softshrink(x):
    return jnp.where(x > LAMBDA, x - LAMBDA,
                     jnp.where(x < -LAMBDA, x + LAMBDA, jnp.zeros_like(x)))


def _round_up(n, m):
    return (n + m - 1) // m * m


def _pad_to(a, shape):
    return jnp.pad(a, [(0, t - s) for s, t in zip(a.shape, shape)])


def _alista_kernel(x_ref, ws_ref, bs_ref, wa_ref, ga_ref, ca_ref, w_ref,
                   b_ref, out_ref, *, num_layers, batch, dpad):
    """Whole forward in one invocation; layers unrolled, z carried in vregs."""
    f32, bf16 = jnp.float32, jnp.bfloat16

    x = x_ref[...]          # (B, Dp) bf16, zero-padded lanes
    ga = ga_ref[...]        # (2*Dp, Dp) bf16 = [W_a^T W_a ; A_a W_a]
    ca = ca_ref[...]        # (1, Dp) bf16

    # x @ W_a computed once; every layer reuses it (algebraic hoist).
    x_wa = jnp.dot(x, wa_ref[...], preferred_element_type=f32)   # (B, Dp) f32

    # Zero rows lifting diff to Dp rows so the c_a reduction comes out as a
    # full 128-lane row.  Hoisted: built once, reused every layer.
    pad_rows = dpad - batch if batch > 1 else 0
    if pad_rows:
        zero_rows = jnp.zeros((pad_rows, dpad), bf16)

    z = jnp.zeros_like(x_wa)             # z_0 = 0
    for i in range(num_layers):
        bi = bs_ref[i]                   # (1, Dp) f32
        if i == 0:
            # z_prev == 0  ->  softshrink(0 @ W_0 + b_0) == softshrink(b_0)
            z_new = jnp.broadcast_to(_softshrink(bi), x_wa.shape)
        else:
            z_new = _softshrink(
                jnp.dot(z.astype(bf16), ws_ref[i],
                        preferred_element_type=f32) + bi)

        diff = z - z_new                 # z_prev - z
        diff_b = diff.astype(bf16)
        z_new_b = z_new.astype(bf16)

        # Fused subtraction matmul: [z_new | diff] @ [G ; AW]
        #   == z_new @ (W_a^T W_a) + diff @ (A_a W_a)
        zd = jnp.concatenate([z_new_b, diff_b], axis=-1)          # (B, 2*Dp)
        sub = jnp.dot(zd, ga, preferred_element_type=f32)         # (B, Dp)

        # torch: matmul((B,D),(D,)) -> (B,), broadcast onto (B,D) along the
        # LAST axis (valid because B == D).  Expressed as an MXU dot yielding
        # a lane-laid row: v[0, j] = diff[j, :] . c_a  (padded lanes -> 0).
        if pad_rows:
            v_src = jnp.concatenate([diff_b, zero_rows], axis=0)  # (Dp, Dp)
        else:
            v_src = diff_b     # batch == Dp, or batch == 1 ((1,1) broadcasts)
        v_row = lax.dot_general(ca, v_src, (((1,), (1,)), ((), ())),
                                preferred_element_type=f32)

        # z + (x - z@W_a^T - diff@A_a) @ W_a + v
        #   == z + x@W_a - z@(W_a^T W_a) - diff@(A_a W_a) + v
        z = _softshrink(z_new + x_wa - sub + v_row)

    # x_recon = z @ W + b
    out_ref[...] = (jnp.dot(z.astype(bf16), w_ref[...],
                            preferred_element_type=f32) + b_ref[...])


def alista_net_forward(x, params, num_layers):
    """x: (B, 1, s, s) float32 -> (B, 1, s, s) float32."""
    B = x.shape[0]
    N, D = params["W"].shape
    assert N == D, "torch forward only defined when input_size == dict_size"
    assert B == D or B == 1, (
        "torch broadcast of (z_prev - z) @ c_a requires batch == dict_size or 1")

    f32, bf16 = jnp.float32, jnp.bfloat16
    dp = _round_up(D, LANES)          # pad dict/input dims to full lane width

    x2d = _pad_to(x.reshape(B, -1).astype(f32), (B, dp)).astype(bf16)

    # Param-only products hoisted out of the layer loop (f32, fed as bf16).
    wa = params["W_a"].astype(f32)                              # (D, D)
    G = wa.T @ wa                                               # W_a^T W_a
    AW = params["A_a"].astype(f32) @ wa                         # A_a W_a
    GA = jnp.concatenate([_pad_to(G, (dp, dp)),
                          _pad_to(AW, (dp, dp))], axis=0).astype(bf16)

    wa_p = _pad_to(wa, (dp, dp)).astype(bf16)
    ws_p = _pad_to(params["Ws"].astype(f32),
                   (num_layers, dp, dp)).astype(bf16)
    bs_p = _pad_to(params["bs"].astype(f32).reshape(num_layers, 1, D),
                   (num_layers, 1, dp))
    ca_p = _pad_to(params["c_a"].astype(f32).reshape(1, D),
                   (1, dp)).astype(bf16)
    w_p = _pad_to(params["W"].astype(f32), (dp, dp)).astype(bf16)
    b_p = _pad_to(params["b"].astype(f32).reshape(1, N), (1, dp))

    # Advisory cost so XLA schedules surrounding ops around the custom call.
    flops = 2 * (2 * B * dp * dp)                     # x@W_a + final z@W
    flops += num_layers * (2 * B * dp * dp            # z @ Ws
                           + 2 * B * (2 * dp) * dp    # fused [z_new|diff]@[G;AW]
                           + 2 * dp * dp)             # c_a reduction
    bytes_accessed = int(
        x2d.size * 2 + B * dp * 4 + ws_p.size * 2 + bs_p.size * 4
        + wa_p.size * 2 + GA.size * 2 + ca_p.size * 2 + w_p.size * 2
        + b_p.size * 4)

    kernel = functools.partial(_alista_kernel, num_layers=num_layers,
                               batch=B, dpad=dp)
    vmem_spec = pl.BlockSpec(memory_space=pltpu.MemorySpace.VMEM)

    out2d = pl.pallas_call(
        kernel,
        out_shape=jax.ShapeDtypeStruct((B, dp), f32),
        in_specs=[vmem_spec] * 8,
        out_specs=vmem_spec,
        cost_estimate=pl.CostEstimate(flops=int(flops), transcendentals=0,
                                      bytes_accessed=bytes_accessed),
    )(x2d, ws_p, bs_p, wa_p, GA, ca_p, w_p, b_p)

    s = int(math.sqrt(N))
    return out2d[:, :N].reshape(B, 1, s, s)


def init_params(key, dict_size, num_layers, input_size):
    """Deterministic synthetic parameters mirroring ALISTANet.__init__."""
    n_keys = 4 + 2 * num_layers
    keys = jax.random.split(key, n_keys)
    f32 = jnp.float32
    W = jax.random.normal(keys[0], (input_size, dict_size), f32)
    A = (jnp.eye(dict_size, dtype=f32)
         - jax.random.normal(keys[1], (dict_size, dict_size), f32) * 0.1)
    c = jax.random.normal(keys[2], (dict_size,), f32)
    b = jax.random.normal(keys[3], (input_size,), f32)

    I = jnp.eye(dict_size, dtype=f32)
    WtW = W.T @ W
    S = jnp.linalg.inv(I + A.T @ A + WtW @ A.T)
    T = WtW @ A.T
    W_a = T @ S
    A_a = A @ S
    c_a = c @ S

    Ws = jnp.stack([jax.random.normal(keys[4 + 2 * i], (dict_size, dict_size), f32)
                    for i in range(num_layers)])
    bs = jnp.stack([jax.random.normal(keys[5 + 2 * i], (dict_size,), f32)
                    for i in range(num_layers)])
    return dict(W=W, b=b, W_a=W_a, A_a=A_a, c_a=c_a, Ws=Ws, bs=bs)


def reference_forward(x, p, num_layers):
    """Pure-JAX mirror of the PyTorch forward (for validation)."""
    hp = jax.lax.Precision.HIGHEST
    B = x.shape[0]
    xf = x.reshape(B, -1).astype(jnp.float32)
    D = p["W_a"].shape[0]
    z = jnp.zeros((B, D), jnp.float32)
    z_prev = z
    for i in range(num_layers):
        z = _softshrink(jnp.matmul(z_prev, p["Ws"][i], precision=hp) + p["bs"][i])
        inner = (xf
                 - jnp.matmul(z, p["W_a"].T, precision=hp)
                 - jnp.matmul(z_prev - z, p["A_a"], precision=hp))
        v = jnp.matmul(z_prev - z, p["c_a"], precision=hp)       # (B,)
        z = z + jnp.matmul(inner, p["W_a"], precision=hp) + v[None, :]
        z = _softshrink(z)
        z_prev = z
    xr = jnp.matmul(z, p["W"], precision=hp) + p["b"]
    s = int(math.sqrt(xf.shape[1]))
    return xr.reshape(B, 1, s, s)


if __name__ == "__main__":
    DICT_SIZE = 64
    INPUT_SIZE = 64          # 8x8 images; must equal DICT_SIZE (see layout note)
    NUM_LAYERS = 3
    BATCH = 64               # torch broadcast requires batch == dict_size (or 1)

    key = jax.random.PRNGKey(0)
    pkey, xkey = jax.random.split(key)
    params = init_params(pkey, DICT_SIZE, NUM_LAYERS, INPUT_SIZE)

    s = int(math.sqrt(INPUT_SIZE))
    x = jax.random.normal(xkey, (BATCH, 1, s, s), jnp.float32)

    out = alista_net_forward(x, params, NUM_LAYERS)
    out = jax.block_until_ready(out)

    ref = reference_forward(x, params, NUM_LAYERS)
    rel = jnp.linalg.norm(out - ref) / (jnp.linalg.norm(ref) + 1e-8)
    assert out.shape == (BATCH, 1, s, s)
    assert bool(rel < 5e-2), f"relative error too large: {rel}"
    print("KERNEL_OK")
</pallas_src>

<mosaic_0001>
module attributes {stable_mosaic.version = 11 : i64} {
  func.func @_alista_kernel(%arg0: memref<64x128xbf16, #tpu.memory_space<vmem>>, %arg1: memref<3x128x128xbf16, #tpu.memory_space<vmem>>, %arg2: memref<3x1x128xf32, #tpu.memory_space<vmem>>, %arg3: memref<128x128xbf16, #tpu.memory_space<vmem>>, %arg4: memref<256x128xbf16, #tpu.memory_space<vmem>>, %arg5: memref<1x128xbf16, #tpu.memory_space<vmem>>, %arg6: memref<128x128xbf16, #tpu.memory_space<vmem>>, %arg7: memref<1x128xf32, #tpu.memory_space<vmem>>, %arg8: memref<64x128xf32, #tpu.memory_space<vmem>>) attributes {dimension_semantics = [], scalar_prefetch = 0 : i64, scratch_operands = 0 : i64, tpu.core_type = #tpu.core_type<tc>} {
    %c0 = arith.constant 0 : index
    %c0_0 = arith.constant 0 : index
    %0 = vector.load %arg0[%c0, %c0_0] : memref<64x128xbf16, #tpu.memory_space<vmem>>, vector<64x128xbf16>
    %c0_1 = arith.constant 0 : index
    %c0_2 = arith.constant 0 : index
    %1 = vector.load %arg4[%c0_1, %c0_2] : memref<256x128xbf16, #tpu.memory_space<vmem>>, vector<256x128xbf16>
    %c0_3 = arith.constant 0 : index
    %c0_4 = arith.constant 0 : index
    %2 = vector.load %arg5[%c0_3, %c0_4] : memref<1x128xbf16, #tpu.memory_space<vmem>>, vector<1x128xbf16>
    %c0_5 = arith.constant 0 : index
    %c0_6 = arith.constant 0 : index
    %3 = vector.load %arg3[%c0_5, %c0_6] : memref<128x128xbf16, #tpu.memory_space<vmem>>, vector<128x128xbf16>
    %cst = arith.constant dense<0.000000e+00> : vector<64x128xf32>
    %4 = tpu.matmul %0, %3, %cst {dimension_numbers = #tpu.dot_dimension_numbers<[1], [0], [0], [1], [0, 0, 1, 1], [], []>} : vector<64x128xbf16>, vector<128x128xbf16>, vector<64x128xf32> -> vector<64x128xf32>
    %cst_7 = arith.constant 0.000000e+00 : bf16
    %5 = vector.broadcast %cst_7 : bf16 to vector<64x128xbf16>
    %cst_8 = arith.constant 0.000000e+00 : f32
    %6 = vector.broadcast %cst_8 : f32 to vector<64x128xf32>
    %c0_9 = arith.constant 0 : index
    %c0_10 = arith.constant 0 : index
    %c0_11 = arith.constant 0 : index
    %7 = vector.load %arg2[%c0_9, %c0_10, %c0_11] : memref<3x1x128xf32, #tpu.memory_space<vmem>>, vector<1x1x128xf32>
    %8 = vector.shape_cast %7 : vector<1x1x128xf32> to vector<1x128xf32>
    %cst_12 = arith.constant 5.000000e-01 : f32
    %9 = vector.broadcast %cst_12 : f32 to vector<1x128xf32>
    %10 = arith.cmpf ogt, %8, %9 : vector<1x128xf32>
    %cst_13 = arith.constant 5.000000e-01 : f32
    %11 = vector.broadcast %cst_13 : f32 to vector<1x128xf32>
    %12 = arith.subf %8, %11 : vector<1x128xf32>
    %cst_14 = arith.constant -5.000000e-01 : f32
    %13 = vector.broadcast %cst_14 : f32 to vector<1x128xf32>
    %14 = arith.cmpf olt, %8, %13 : vector<1x128xf32>
    %cst_15 = arith.constant 5.000000e-01 : f32
    %15 = vector.broadcast %cst_15 : f32 to vector<1x128xf32>
    %16 = arith.addf %8, %15 : vector<1x128xf32>
    %cst_16 = arith.constant 0.000000e+00 : f32
    %17 = vector.broadcast %cst_16 : f32 to vector<1x128xf32>
    %18 = arith.select %14, %16, %17 : vector<1x128xi1>, vector<1x128xf32>
    %19 = arith.select %10, %12, %18 : vector<1x128xi1>, vector<1x128xf32>
    %20 = vector.shape_cast %19 : vector<1x128xf32> to vector<1x128xf32>
    %21 = vector.broadcast %20 : vector<1x128xf32> to vector<64x128xf32>
    %22 = arith.subf %6, %21 : vector<64x128xf32>
    %23 = arith.truncf %22 : vector<64x128xf32> to vector<64x128xbf16>
    %24 = arith.truncf %21 : vector<64x128xf32> to vector<64x128xbf16>
    %25 = tpu.concatenate %24, %23 in 1 : vector<64x128xbf16>, vector<64x128xbf16> -> vector<64x256xbf16>
    %cst_17 = arith.constant dense<0.000000e+00> : vector<64x128xf32>
    %26 = tpu.matmul %25, %1, %cst_17 {dimension_numbers = #tpu.dot_dimension_numbers<[1], [0], [0], [1], [0, 0, 1, 1], [], []>} : vector<64x256xbf16>, vector<256x128xbf16>, vector<64x128xf32> -> vector<64x128xf32>
    %27 = tpu.concatenate %23, %5 in 0 : vector<64x128xbf16>, vector<64x128xbf16> -> vector<128x128xbf16>
    %cst_18 = arith.constant dense<0.000000e+00> : vector<1x128xf32>
    %28 = tpu.matmul %2, %27, %cst_18 {dimension_numbers = #tpu.dot_dimension_numbers<[1], [1], [0], [0], [0, 0, 1, 0], [], []>} : vector<1x128xbf16>, vector<128x128xbf16>, vector<1x128xf32> -> vector<1x128xf32>
    %29 = arith.addf %21, %4 : vector<64x128xf32>
    %30 = arith.subf %29, %26 : vector<64x128xf32>
    %31 = vector.broadcast %28 : vector<1x128xf32> to vector<64x128xf32>
    %32 = arith.addf %30, %31 : vector<64x128xf32>
    %cst_19 = arith.constant 5.000000e-01 : f32
    %33 = vector.broadcast %cst_19 : f32 to vector<64x128xf32>
    %34 = arith.cmpf ogt, %32, %33 : vector<64x128xf32>
    %cst_20 = arith.constant 5.000000e-01 : f32
    %35 = vector.broadcast %cst_20 : f32 to vector<64x128xf32>
    %36 = arith.subf %32, %35 : vector<64x128xf32>
    %cst_21 = arith.constant -5.000000e-01 : f32
    %37 = vector.broadcast %cst_21 : f32 to vector<64x128xf32>
    %38 = arith.cmpf olt, %32, %37 : vector<64x128xf32>
    %cst_22 = arith.constant 5.000000e-01 : f32
    %39 = vector.broadcast %cst_22 : f32 to vector<64x128xf32>
    %40 = arith.addf %32, %39 : vector<64x128xf32>
    %cst_23 = arith.constant 0.000000e+00 : f32
    %41 = vector.broadcast %cst_23 : f32 to vector<64x128xf32>
    %42 = arith.select %38, %40, %41 : vector<64x128xi1>, vector<64x128xf32>
    %43 = arith.select %34, %36, %42 : vector<64x128xi1>, vector<64x128xf32>
    %c1 = arith.constant 1 : index
    %c0_24 = arith.constant 0 : index
    %c0_25 = arith.constant 0 : index
    %44 = vector.load %arg2[%c1, %c0_24, %c0_25] : memref<3x1x128xf32, #tpu.memory_space<vmem>>, vector<1x1x128xf32>
    %45 = vector.shape_cast %44 : vector<1x1x128xf32> to vector<1x128xf32>
    %46 = arith.truncf %43 : vector<64x128xf32> to vector<64x128xbf16>
    %c1_26 = arith.constant 1 : index
    %c0_27 = arith.constant 0 : index
    %c0_28 = arith.constant 0 : index
    %47 = vector.load %arg1[%c1_26, %c0_27, %c0_28] : memref<3x128x128xbf16, #tpu.memory_space<vmem>>, vector<1x128x128xbf16>
    %48 = vector.shape_cast %47 : vector<1x128x128xbf16> to vector<128x128xbf16>
    %cst_29 = arith.constant dense<0.000000e+00> : vector<64x128xf32>
    %49 = tpu.matmul %46, %48, %cst_29 {dimension_numbers = #tpu.dot_dimension_numbers<[1], [0], [0], [1], [0, 0, 1, 1], [], []>} : vector<64x128xbf16>, vector<128x128xbf16>, vector<64x128xf32> -> vector<64x128xf32>
    %50 = vector.broadcast %45 : vector<1x128xf32> to vector<64x128xf32>
    %51 = arith.addf %49, %50 : vector<64x128xf32>
    %cst_30 = arith.constant 5.000000e-01 : f32
    %52 = vector.broadcast %cst_30 : f32 to vector<64x128xf32>
    %53 = arith.cmpf ogt, %51, %52 : vector<64x128xf32>
    %cst_31 = arith.constant 5.000000e-01 : f32
    %54 = vector.broadcast %cst_31 : f32 to vector<64x128xf32>
    %55 = arith.subf %51, %54 : vector<64x128xf32>
    %cst_32 = arith.constant -5.000000e-01 : f32
    %56 = vector.broadcast %cst_32 : f32 to vector<64x128xf32>
    %57 = arith.cmpf olt, %51, %56 : vector<64x128xf32>
    %cst_33 = arith.constant 5.000000e-01 : f32
    %58 = vector.broadcast %cst_33 : f32 to vector<64x128xf32>
    %59 = arith.addf %51, %58 : vector<64x128xf32>
    %cst_34 = arith.constant 0.000000e+00 : f32
    %60 = vector.broadcast %cst_34 : f32 to vector<64x128xf32>
    %61 = arith.select %57, %59, %60 : vector<64x128xi1>, vector<64x128xf32>
    %62 = arith.select %53, %55, %61 : vector<64x128xi1>, vector<64x128xf32>
    %63 = arith.subf %43, %62 : vector<64x128xf32>
    %64 = arith.truncf %63 : vector<64x128xf32> to vector<64x128xbf16>
    %65 = arith.truncf %62 : vector<64x128xf32> to vector<64x128xbf16>
    %66 = tpu.concatenate %65, %64 in 1 : vector<64x128xbf16>, vector<64x128xbf16> -> vector<64x256xbf16>
    %cst_35 = arith.constant dense<0.000000e+00> : vector<64x128xf32>
    %67 = tpu.matmul %66, %1, %cst_35 {dimension_numbers = #tpu.dot_dimension_numbers<[1], [0], [0], [1], [0, 0, 1, 1], [], []>} : vector<64x256xbf16>, vector<256x128xbf16>, vector<64x128xf32> -> vector<64x128xf32>
    %68 = tpu.concatenate %64, %5 in 0 : vector<64x128xbf16>, vector<64x128xbf16> -> vector<128x128xbf16>
    %cst_36 = arith.constant dense<0.000000e+00> : vector<1x128xf32>
    %69 = tpu.matmul %2, %68, %cst_36 {dimension_numbers = #tpu.dot_dimension_numbers<[1], [1], [0], [0], [0, 0, 1, 0], [], []>} : vector<1x128xbf16>, vector<128x128xbf16>, vector<1x128xf32> -> vector<1x128xf32>
    %70 = arith.addf %62, %4 : vector<64x128xf32>
    %71 = arith.subf %70, %67 : vector<64x128xf32>
    %72 = vector.broadcast %69 : vector<1x128xf32> to vector<64x128xf32>
    %73 = arith.addf %71, %72 : vector<64x128xf32>
    %cst_37 = arith.constant 5.000000e-01 : f32
    %74 = vector.broadcast %cst_37 : f32 to vector<64x128xf32>
    %75 = arith.cmpf ogt, %73, %74 : vector<64x128xf32>
    %cst_38 = arith.constant 5.000000e-01 : f32
    %76 = vector.broadcast %cst_38 : f32 to vector<64x128xf32>
    %77 = arith.subf %73, %76 : vector<64x128xf32>
    %cst_39 = arith.constant -5.000000e-01 : f32
    %78 = vector.broadcast %cst_39 : f32 to vector<64x128xf32>
    %79 = arith.cmpf olt, %73, %78 : vector<64x128xf32>
    %cst_40 = arith.constant 5.000000e-01 : f32
    %80 = vector.broadcast %cst_40 : f32 to vector<64x128xf32>
    %81 = arith.addf %73, %80 : vector<64x128xf32>
    %cst_41 = arith.constant 0.000000e+00 : f32
    %82 = vector.broadcast %cst_41 : f32 to vector<64x128xf32>
    %83 = arith.select %79, %81, %82 : vector<64x128xi1>, vector<64x128xf32>
    %84 = arith.select %75, %77, %83 : vector<64x128xi1>, vector<64x128xf32>
    %c2 = arith.constant 2 : index
    %c0_42 = arith.constant 0 : index
    %c0_43 = arith.constant 0 : index
    %85 = vector.load %arg2[%c2, %c0_42, %c0_43] : memref<3x1x128xf32, #tpu.memory_space<vmem>>, vector<1x1x128xf32>
    %86 = vector.shape_cast %85 : vector<1x1x128xf32> to vector<1x128xf32>
    %87 = arith.truncf %84 : vector<64x128xf32> to vector<64x128xbf16>
    %c2_44 = arith.constant 2 : index
    %c0_45 = arith.constant 0 : index
    %c0_46 = arith.constant 0 : index
    %88 = vector.load %arg1[%c2_44, %c0_45, %c0_46] : memref<3x128x128xbf16, #tpu.memory_space<vmem>>, vector<1x128x128xbf16>
    %89 = vector.shape_cast %88 : vector<1x128x128xbf16> to vector<128x128xbf16>
    %cst_47 = arith.constant dense<0.000000e+00> : vector<64x128xf32>
    %90 = tpu.matmul %87, %89, %cst_47 {dimension_numbers = #tpu.dot_dimension_numbers<[1], [0], [0], [1], [0, 0, 1, 1], [], []>} : vector<64x128xbf16>, vector<128x128xbf16>, vector<64x128xf32> -> vector<64x128xf32>
    %91 = vector.broadcast %86 : vector<1x128xf32> to vector<64x128xf32>
    %92 = arith.addf %90, %91 : vector<64x128xf32>
    %cst_48 = arith.constant 5.000000e-01 : f32
    %93 = vector.broadcast %cst_48 : f32 to vector<64x128xf32>
    %94 = arith.cmpf ogt, %92, %93 : vector<64x128xf32>
    %cst_49 = arith.constant 5.000000e-01 : f32
    %95 = vector.broadcast %cst_49 : f32 to vector<64x128xf32>
    %96 = arith.subf %92, %95 : vector<64x128xf32>
    %cst_50 = arith.constant -5.000000e-01 : f32
    %97 = vector.broadcast %cst_50 : f32 to vector<64x128xf32>
    %98 = arith.cmpf olt, %92, %97 : vector<64x128xf32>
    %cst_51 = arith.constant 5.000000e-01 : f32
    %99 = vector.broadcast %cst_51 : f32 to vector<64x128xf32>
    %100 = arith.addf %92, %99 : vector<64x128xf32>
    %cst_52 = arith.constant 0.000000e+00 : f32
    %101 = vector.broadcast %cst_52 : f32 to vector<64x128xf32>
    %102 = arith.select %98, %100, %101 : vector<64x128xi1>, vector<64x128xf32>
    %103 = arith.select %94, %96, %102 : vector<64x128xi1>, vector<64x128xf32>
    %104 = arith.subf %84, %103 : vector<64x128xf32>
    %105 = arith.truncf %104 : vector<64x128xf32> to vector<64x128xbf16>
    %106 = arith.truncf %103 : vector<64x128xf32> to vector<64x128xbf16>
    %107 = tpu.concatenate %106, %105 in 1 : vector<64x128xbf16>, vector<64x128xbf16> -> vector<64x256xbf16>
    %cst_53 = arith.constant dense<0.000000e+00> : vector<64x128xf32>
    %108 = tpu.matmul %107, %1, %cst_53 {dimension_numbers = #tpu.dot_dimension_numbers<[1], [0], [0], [1], [0, 0, 1, 1], [], []>} : vector<64x256xbf16>, vector<256x128xbf16>, vector<64x128xf32> -> vector<64x128xf32>
    %109 = tpu.concatenate %105, %5 in 0 : vector<64x128xbf16>, vector<64x128xbf16> -> vector<128x128xbf16>
    %cst_54 = arith.constant dense<0.000000e+00> : vector<1x128xf32>
    %110 = tpu.matmul %2, %109, %cst_54 {dimension_numbers = #tpu.dot_dimension_numbers<[1], [1], [0], [0], [0, 0, 1, 0], [], []>} : vector<1x128xbf16>, vector<128x128xbf16>, vector<1x128xf32> -> vector<1x128xf32>
    %111 = arith.addf %103, %4 : vector<64x128xf32>
    %112 = arith.subf %111, %108 : vector<64x128xf32>
    %113 = vector.broadcast %110 : vector<1x128xf32> to vector<64x128xf32>
    %114 = arith.addf %112, %113 : vector<64x128xf32>
    %cst_55 = arith.constant 5.000000e-01 : f32
    %115 = vector.broadcast %cst_55 : f32 to vector<64x128xf32>
    %116 = arith.cmpf ogt, %114, %115 : vector<64x128xf32>
    %cst_56 = arith.constant 5.000000e-01 : f32
    %117 = vector.broadcast %cst_56 : f32 to vector<64x128xf32>
    %118 = arith.subf %114, %117 : vector<64x128xf32>
    %cst_57 = arith.constant -5.000000e-01 : f32
    %119 = vector.broadcast %cst_57 : f32 to vector<64x128xf32>
    %120 = arith.cmpf olt, %114, %119 : vector<64x128xf32>
    %cst_58 = arith.constant 5.000000e-01 : f32
    %121 = vector.broadcast %cst_58 : f32 to vector<64x128xf32>
    %122 = arith.addf %114, %121 : vector<64x128xf32>
    %cst_59 = arith.constant 0.000000e+00 : f32
    %123 = vector.broadcast %cst_59 : f32 to vector<64x128xf32>
    %124 = arith.select %120, %122, %123 : vector<64x128xi1>, vector<64x128xf32>
    %125 = arith.select %116, %118, %124 : vector<64x128xi1>, vector<64x128xf32>
    %126 = arith.truncf %125 : vector<64x128xf32> to vector<64x128xbf16>
    %c0_60 = arith.constant 0 : index
    %c0_61 = arith.constant 0 : index
    %127 = vector.load %arg6[%c0_60, %c0_61] : memref<128x128xbf16, #tpu.memory_space<vmem>>, vector<128x128xbf16>
    %cst_62 = arith.constant dense<0.000000e+00> : vector<64x128xf32>
    %128 = tpu.matmul %126, %127, %cst_62 {dimension_numbers = #tpu.dot_dimension_numbers<[1], [0], [0], [1], [0, 0, 1, 1], [], []>} : vector<64x128xbf16>, vector<128x128xbf16>, vector<64x128xf32> -> vector<64x128xf32>
    %c0_63 = arith.constant 0 : index
    %c0_64 = arith.constant 0 : index
    %129 = vector.load %arg7[%c0_63, %c0_64] : memref<1x128xf32, #tpu.memory_space<vmem>>, vector<1x128xf32>
    %130 = vector.broadcast %129 : vector<1x128xf32> to vector<64x128xf32>
    %131 = arith.addf %128, %130 : vector<64x128xf32>
    %c0_65 = arith.constant 0 : index
    %c0_66 = arith.constant 0 : index
    %132 = vector.load %arg8[%c0_65, %c0_66] : memref<64x128xf32, #tpu.memory_space<vmem>>, vector<64x128xf32>
    tpu.vector_store %arg8[%c0_65, %c0_66], %131 {strides = array<i32>} : memref<64x128xf32, #tpu.memory_space<vmem>>, vector<64x128xf32>,
    return
  }
}

</mosaic_0001>

<bundles_post_ra>
// kernel: tpu_custom_call.1
= control target key start
LH: loop header
LB: loop body
LE: loop exit
PB: predicated region body
PF: predicated region fallthrough
CT: control target
= control target key end

     0   :  { %13 = vsyncpa [#allocation3], 0  ;;  %s2543_s0 = inlined_call_operand.hbm [shape: bf16[64,128], index: 0, kind: input, shape index: {}]   ;;  %s2544_s1 = inlined_call_operand.hbm [shape: bf16[3,128,128], index: 1, kind: input, shape index: {}]   ;;  %s2545_s2 = inlined_call_operand.vmem [shape: f32[3,1,128], index: 2, kind: input, shape index: {}]   ;;  %s2546_s3 = inlined_call_operand.hbm [shape: bf16[128,128], index: 3, kind: input, shape index: {}]   ;;  %s2547_s4 = inlined_call_operand.hbm [shape: bf16[256,128], index: 4, kind: input, shape index: {}]   ;;  %s2548_s5 = inlined_call_operand.vmem [shape: bf16[1,128], index: 5, kind: input, shape index: {}]   ;;  %s2549_s6 = inlined_call_operand.hbm [shape: bf16[128,128], index: 6, kind: input, shape index: {}]   ;;  %s2550_s7 = inlined_call_operand.vmem [shape: f32[1,128], index: 7, kind: input, shape index: {}]   ;;  %s2551_s8 = inlined_call_operand.hbm [shape: f32[64,128], index: 8, kind: output, shape index: {}]  }
   0x1   :  { %14 = vsyncpa [#allocation6], 0 }
   0x2   :  { %15 = vsyncpa [#allocation9], 0 }
   0x3   :  { %16 = vsyncpa [#allocation4], 0  ;;  %s2132_s27 = smov [#allocation5]   ;;  %s2133_s29 = smov [#allocation8]  }
   0x4   :  { %s34_s28 = sshll.u32 %s2132_s27, 4  ;;  %s60_s30 = sshll.u32 %s2133_s29, 4  ;;  %s35_s28 = int_to_ptr.vmem [resolvable:$true] %s34_s28  ;;  %s61_s30 = int_to_ptr.vmem [resolvable:$true] %s60_s30 }
   0x5   :  { %s2012_s9 = scalar_lea.vmem %s35_s28, 3072  ;;  %p2017_p1 = scmp.lt.s32.totalorder %s35_s28, %s35_s28 }
   0x6   :  { %p2013_p0 = scmp.ne.s32.totalorder %s35_s28, %s2012_s9  ;;  %p2018_p2 = scmp.lt.s32.totalorder %s2012_s9, %s2012_s9 }
   0x8   :  { %p2019_p3 = por %p2018_p2, %p2017_p1 }
   0xa   :  { %p2020_p4 = pnand %p2019_p3, %p2013_p0 }
   0xc   :  { %2023 = shalt.err (!%p2020_p4)
}
   0xd   :  { %s2134_s10 = smov 64   ;;  %s2135_s11 = smov 4  }
   0xe   :  { %40 = dma.hbm_to_vmem [thread:$0]  %s2544_s1, 3072, %s35_s28, [#allocation6], %s2134_s10, %s2134_s10, %s2135_s11  }
   0xf   :  { %s2032_s14 = scalar_lea.vmem %s61_s30, 2048  ;;  %p2037_p6 = scmp.lt.s32.totalorder %s61_s30, %s61_s30 }
  0x10   :  { %p2033_p5 = scmp.ne.s32.totalorder %s61_s30, %s2032_s14  ;;  %p2038_p7 = scmp.lt.s32.totalorder %s2032_s14, %s2032_s14 }
  0x12   :  { %p2039_p8 = por %p2038_p7, %p2037_p6 }
  0x14   :  { %p2040_p9 = pnand %p2039_p8, %p2033_p5 }
  0x16   :  { %2043 = shalt.err (!%p2040_p9)
}
  0x17   :  { %66 = dma.hbm_to_vmem [thread:$0]  %s2547_s4, 2048, %s61_s30, [#allocation9], %s2134_s10, %s2134_s10, %s2135_s11  }
  0x18   :  { %s2136_s17 = smov [#allocation2]   ;;  %s2137_s19 = smov [#allocation7]  }
  0x19   :  { %s22_s18 = sshll.u32 %s2136_s17, 4  ;;  %s48_s20 = sshll.u32 %s2137_s19, 4  ;;  %s23_s18 = int_to_ptr.vmem [resolvable:$true] %s22_s18  ;;  %s49_s20 = int_to_ptr.vmem [resolvable:$true] %s48_s20 }
  0x1a   :  { %s2052_s1 = scalar_lea.vmem %s23_s18, 512  ;;  %p2057_p11 = scmp.lt.s32.totalorder %s23_s18, %s23_s18 }
  0x1b   :  { %p2053_p10 = scmp.ne.s32.totalorder %s23_s18, %s2052_s1  ;;  %p2058_p12 = scmp.lt.s32.totalorder %s2052_s1, %s2052_s1 }
  0x1d   :  { %p2059_p13 = por %p2058_p12, %p2057_p11 }
  0x1f   :  { %p2060_p0 = pnand %p2059_p13, %p2053_p10 }
  0x21   :  { %2063 = shalt.err (!%p2060_p0)
}
  0x22   :  { %28 = dma.hbm_to_vmem [thread:$0]  %s2543_s0, 512, %s23_s18, [#allocation3], %s2134_s10, %s2134_s10, %s2135_s11  }
  0x23   :  { %s2072_s4 = scalar_lea.vmem %s49_s20, 1024  ;;  %p2077_p2 = scmp.lt.s32.totalorder %s49_s20, %s49_s20 }
  0x24   :  { %p2073_p1 = scmp.ne.s32.totalorder %s49_s20, %s2072_s4  ;;  %p2078_p3 = scmp.lt.s32.totalorder %s2072_s4, %s2072_s4 }
  0x26   :  { %p2079_p4 = por %p2078_p3, %p2077_p2 }
  0x28   :  { %p2080_p5 = pnand %p2079_p4, %p2073_p1 }
  0x2a   :  { %2083 = shalt.err (!%p2080_p5)
}
  0x2b   :  { %54 = dma.hbm_to_vmem [thread:$0]  %s2546_s3, 1024, %s49_s20, [#allocation6], %s2134_s10, %s2134_s10, %s2135_s11  }
  0x2c   :  { %s2138_s25 = smov [#allocation10]  }
  0x2d   :  { %s74_s26 = sshll.u32 %s2138_s25, 4  ;;  %s75_s26 = int_to_ptr.vmem [resolvable:$true] %s74_s26 }
  0x2e   :  { %s2092_s27 = scalar_lea.vmem %s75_s26, 1024  ;;  %p2097_p7 = scmp.lt.s32.totalorder %s75_s26, %s75_s26 }
  0x2f   :  { %p2093_p6 = scmp.ne.s32.totalorder %s75_s26, %s2092_s27  ;;  %p2098_p8 = scmp.lt.s32.totalorder %s2092_s27, %s2092_s27 }
  0x31   :  { %p2099_p9 = por %p2098_p8, %p2097_p7 }
  0x33   :  { %p2100_p10 = pnand %p2099_p9, %p2093_p6 }
  0x35   :  { %2103 = shalt.err (!%p2100_p10)
}
  0x36   :  { %80 = dma.hbm_to_vmem [thread:$0]  %s2549_s6, 1024, %s75_s26, [#allocation9], %s2134_s10, %s2134_s10, %s2135_s11  }
  0x37   :  { %2124 = dma.done.wait [#allocation3], 512  }
  0x38   :  { %2125 = vsyncadd [#allocation3], 4294966784 }
  0x39   :  { %2126 = dma.done.wait [#allocation6], 4096  }
  0x3a   :  { %2127 = vsyncadd [#allocation6], 4294963200 }
  0x3b   :  { %2128 = dma.done.wait [#allocation9], 3072  }
  0x3c   :  { %2129 = vsyncadd [#allocation9], 4294964224  ;;  %v1952_v0 = vld [vmem:[#allocation7 + $0x38] sm:$0xff]   ;;  %v1955_v3 = vld [vmem:[#allocation7 + $0x30] sm:$0xff]   ;;  %v301_v16 = vlaneseq  ;;  %v2139_v37 = vmov 0.0   ;;  %vm2140_vm2 = vmmov 0  }
  0x3d   :  { %v2219_v1 = vld [vmem:[#allocation8 + $0x78] sm:$0xff]   ;;  %1808 = vmatprep.subr.bf16.mxu0 %v1952_v0  ;;  %v2225_v4 = vld [vmem:[#allocation8 + $0x70] sm:$0xff]   ;;  %v1958_v6 = vld [vmem:[#allocation7 + $0x28] sm:$0xff]   ;;  %s2141_s13 = smov [#allocation11]  }
  0x3e   :  { %v2221_v2 = vld [vmem:[#allocation8 + $0x38] sm:$0xff]   ;;  %1637 = vmatprep.subr.bf16.mxu1 %v2219_v1  ;;  %1809 = vmatpush3.bf16.msra.mxu0 %v1952_v0  ;;  %v2227_v5 = vld [vmem:[#allocation8 + $0x30] sm:$0xff]   ;;  %v2230_v7 = vld [vmem:[#allocation8 + $0x68] sm:$0xff]   ;;  %v302_v20 = vshrl.u32 %v301_v16, 7 }
  0x3f   :  { %1638 = vmatpush3.bf16.msra.mxu1 %v2221_v2  ;;  %1810 = vmatprep.subr.bf16.mxu0 %v1955_v3  ;;  %v2233_v8 = vld [vmem:[#allocation8 + $0x28] sm:$0xff]   ;;  %v1961_v9 = vld [vmem:[#allocation7 + $0x20] sm:$0xff]   ;;  %v1964_v12 = vld [vmem:[#allocation7 + $0x18] sm:$0xff]  }
  0x40   :  { %1639 = vmatprep.subr.bf16.mxu1 %v2225_v4  ;;  %v2236_v10 = vld [vmem:[#allocation8 + $0x60] sm:$0xff]   ;;  %v2242_v13 = vld [vmem:[#allocation8 + $0x58] sm:$0xff]   ;;  %v1967_v15 = vld [vmem:[#allocation7 + $0x10] sm:$0xff]   ;;  %v2261_v26 = vsub.s32 0, %v302_v20 }
  0x41   :  { %v2238_v11 = vld [vmem:[#allocation8 + $0x20] sm:$0xff]   ;;  %v2244_v14 = vld [vmem:[#allocation8 + $0x18] sm:$0xff]   ;;  %v2248_v17 = vld [vmem:[#allocation8 + $0x50] sm:$0xff]  }
  0x42   :  { %1811 = vmatpush3.bf16.msra.mxu0 %v1955_v3  ;;  %v2250_v18 = vld [vmem:[#allocation8 + $0x10] sm:$0xff]   ;;  %v1970_v19 = vld [vmem:[#allocation7 + $0x8] sm:$0xff]   ;;  %v1973_v23 = vld [vmem:[#allocation7] sm:$0xff]  }
  0x43   :  { %1640 = vmatpush3.bf16.msra.mxu1 %v2227_v5  ;;  %1812 = vmatprep.subr.bf16.mxu0 %v1958_v6  ;;  %v2254_v21 = vld [vmem:[#allocation8 + $0x48] sm:$0xff]   ;;  %v2258_v24 = vld [vmem:[#allocation8 + $0x40] sm:$0xff]   ;;  %v1978_v34 = vld [vmem:[#allocation2 + $0x10] sm:$0xff]  }
  0x44   :  { %1641 = vmatprep.subr.bf16.mxu1 %v2230_v7  ;;  %v2256_v22 = vld [vmem:[#allocation8 + $0x8] sm:$0xff]   ;;  %v1976_v25 = vld [vmem:[#allocation2] sm:$0xff]   ;;  %v1979_v40 = vld [vmem:[#allocation2 + $0x18] sm:$0xff]  }
  0x45   :  { %v293_v27 = vld [vmem:[%s2545_s2] sm:$0x1]  ;;  %1824 = vmatprep.mubr.bf16.mxu0 %v1976_v25  ;;  %v1977_v32 = vld [vmem:[#allocation2 + $0x8] sm:$0xff]   ;;  %v1980_v42 = vld [vmem:[#allocation5 + $0x78] sm:$0xff]  }
  0x46   :  { %1813 = vmatpush3.bf16.msra.mxu0 %v1958_v6  ;;  %vm294_vm0 = vcmp.gt.f32.partialorder %v293_v27, 0.5  ;;  %v1539_v28 = vadd.f32 -0.5, %v293_v27  ;;  %vm296_vm1 = vcmp.lt.f32.partialorder %v293_v27, -0.5  ;;  %v297_v29 = vadd.f32 0.5, %v293_v27  ;;  %v2268_v30 = vld [vmem:[#allocation8] sm:$0xff]   ;;  %v1981_v43 = vld [vmem:[#allocation5 + $0x70] sm:$0xff]  }
  0x47   :  { %1642 = vmatpush3.bf16.msra.mxu1 %v2233_v8  ;;  %1814 = vmatprep.subr.bf16.mxu0 %v1961_v9  ;;  %v2288_v41 = vld [vmem:[%s2548_s5] sm:$0x1]  ;;  %v1982_v44 = vld [vmem:[#allocation5 + $0x68] sm:$0xff]   ;;  %v1984_v46 = vld [vmem:[#allocation5 + $0x58] sm:$0xff]  }
  0x48   :  { %1643 = vmatprep.subr.bf16.mxu1 %v2236_v10  ;;  %v298_v31 = vsel %vm296_vm1, %v297_v29, 0.0  ;;  %v1983_v45 = vld [vmem:[#allocation5 + $0x60] sm:$0xff]   ;;  %v1985_v47 = vld [vmem:[#allocation5 + $0x50] sm:$0xff]   ;;  %v1986_v48 = vld [vmem:[#allocation5 + $0x48] sm:$0xff]  }
  0x49   :  { %v299_v33 = vsel %vm294_vm0, %v1539_v28, %v298_v31  ;;  %v1987_v49 = vld [vmem:[#allocation5 + $0x40] sm:$0xff]  }
  0x4a   :  { %1815 = vmatpush3.bf16.msra.mxu0 %v1961_v9  ;;  %v2272_v35 = vrot.slane %v299_v33, %v2261_v26 }
  0x4b   :  { %1644 = vmatpush3.bf16.msra.mxu1 %v2238_v11  ;;  %1816 = vmatprep.subr.bf16.mxu0 %v1964_v12 }
  0x4c   :  { %1645 = vmatprep.subr.bf16.mxu1 %v2242_v13  ;;  %v306_v36 = vsub.f32 0.0, %v2272_v35  ;;  %v308_v38 = vpack.c.bf16 %v2272_v35, %v2272_v35 }
  0x4e   :  { %1817 = vmatpush3.bf16.msra.mxu0 %v1964_v12  ;;  %v307_v39 = vpack.c.bf16 %v306_v36, %v306_v36 }
  0x4f   :  { %1646 = vmatpush3.bf16.msra.mxu1 %v2244_v14  ;;  %1818 = vmatprep.subr.bf16.mxu0 %v1967_v15 }
  0x50   :  { %1647 = vmatprep.subr.bf16.mxu1 %v2248_v17  ;;  %437 = vmatprep.mubr.bf16.mxu1 %v307_v39 }
  0x52   :  { %1819 = vmatpush3.bf16.msra.mxu0 %v1967_v15 }
  0x53   :  { %1648 = vmatpush3.bf16.msra.mxu1 %v2250_v18  ;;  %1820 = vmatprep.subr.bf16.mxu0 %v1970_v19 }
  0x54   :  { %1649 = vmatprep.subr.bf16.mxu1 %v2254_v21 }
  0x56   :  { %1821 = vmatpush3.bf16.msra.mxu0 %v1970_v19 }
  0x57   :  { %1650 = vmatpush3.bf16.msra.mxu1 %v2256_v22  ;;  %1822 = vmatprep.subr.bf16.mxu0 %v1973_v23 }
  0x58   :  { %1651 = vmatprep.subr.bf16.mxu1 %v2258_v24 }
  0x5a   :  { %1823 = vmatpush3.bf16.msra.mxu0 %v1973_v23 }
  0x5b   :  { %1652 = vmatpush3.bf16.msra.mxu1 %v2268_v30  ;;  %1832 = vmatprep.subr.bf16.mxu0 %v2139_v37 }
  0x5c   :  { %1844 = vmatprep.subr.bf16.mxu1 %v1980_v42 }
  0x5d   :  { %1825 = vmatmul.mubr.bf16.vlgmr.msra.gmra.mxu0 %v1977_v32 }
  0x5e   :  { %1828 = vmatprep.mubr.bf16.mxu0 %v1978_v34  ;;  %1833 = vmatpush3.bf16.xpose.msra.mxu0 %v307_v39 }
  0x5f   :  { %438 = vmatmul.mubr.bf16.vlgmr.msra.gmra.mxu1 %v308_v38  ;;  %1834 = vmatprep.subr.bf16.mxu0 %v2139_v37 }
  0x60   :  { %445 = vmatprep.mubr.bf16.mxu1 %v307_v39  ;;  %1845 = vmatpush3.bf16.msra.mxu1 %v1980_v42 }
  0x61   :  { %1846 = vmatprep.subr.bf16.mxu1 %v1981_v43 }
  0x64   :  { %1847 = vmatpush3.bf16.msra.mxu1 %v1981_v43 }
  0x65   :  { %1829 = vmatmul.mubr.bf16.gmra.mxu0 %v1979_v40  ;;  %1848 = vmatprep.subr.bf16.mxu1 %v1982_v44 }
  0x66   :  { %1840 = vmatprep.mubr.msk.bf16.mxu0 %vm2140_vm2, %v2139_v37  ;;  %1835 = vmatpush3.bf16.xpose.msra.mxu0 %v307_v39 }
  0x67   :  { %446 = vmatmul.mubr.bf16.gmra.mxu1 %v308_v38  ;;  %1836 = vmatprep.subr.bf16.mxu0 %v2139_v37 }
  0x68   :  { %453 = vmatprep.mubr.bf16.mxu1 %v307_v39  ;;  %1849 = vmatpush3.bf16.msra.mxu1 %v1982_v44 }
  0x69   :  { %1850 = vmatprep.subr.bf16.mxu1 %v1983_v45 }
  0x6c   :  { %1851 = vmatpush3.bf16.msra.mxu1 %v1983_v45 }
  0x6d   :  { %1852 = vmatprep.subr.bf16.mxu1 %v1984_v46 }
  0x6e   :  { %1837 = vmatpush3.bf16.xpose.msra.mxu0 %v307_v39 }
  0x6f   :  { %454 = vmatmul.mubr.bf16.gmra.mxu1 %v308_v38  ;;  %1838 = vmatprep.subr.bf16.mxu0 %v2139_v37 }
  0x70   :  { %461 = vmatprep.mubr.bf16.mxu1 %v307_v39  ;;  %1853 = vmatpush3.bf16.msra.mxu1 %v1984_v46 }
  0x71   :  { %1854 = vmatprep.subr.bf16.mxu1 %v1985_v47 }
  0x74   :  { %1855 = vmatpush3.bf16.msra.mxu1 %v1985_v47 }
  0x75   :  { %1856 = vmatprep.subr.bf16.mxu1 %v1986_v48 }
  0x76   :  { %1839 = vmatpush3.bf16.xpose.msra.mxu0 %v307_v39 }
  0x77   :  { %462 = vmatmul.mubr.bf16.gmra.mxu1 %v308_v38  ;;  %1694 = vmatprep.subr.bf16.mxu0 %v2219_v1 }
  0x78   :  { %1857 = vmatpush3.bf16.msra.mxu1 %v1986_v48 }
  0x79   :  { %1858 = vmatprep.subr.bf16.mxu1 %v1987_v49 }
  0x7c   :  { %1859 = vmatpush3.bf16.msra.mxu1 %v1987_v49 }
  0x7d   :  { %1841 = vmatmul.mubr.bf16.vlgmr.msra.gmra.mxu0 %v2288_v41  ;;  %1868 = vmatprep.subr.bf16.mxu1 %v2139_v37 }
  0x7e   :  { %1695 = vmatpush3.bf16.msra.mxu0 %v2221_v2 }
  0x7f   :  { %1696 = vmatprep.subr.bf16.mxu0 %v2225_v4 }
  0x82   :  { %1697 = vmatpush3.bf16.msra.mxu0 %v2227_v5 }
  0x83   :  { %1698 = vmatprep.subr.bf16.mxu0 %v2230_v7 }
  0x86   :  { %1699 = vmatpush3.bf16.msra.mxu0 %v2233_v8 }
  0x87   :  { %1700 = vmatprep.subr.bf16.mxu0 %v2236_v10 }
  0x8a   :  { %1701 = vmatpush3.bf16.msra.mxu0 %v2238_v11 }
  0x8b   :  { %1702 = vmatprep.subr.bf16.mxu0 %v2242_v13 }
  0x8e   :  { %1703 = vmatpush3.bf16.msra.mxu0 %v2244_v14 }
  0x8f   :  { %1704 = vmatprep.subr.bf16.mxu0 %v2248_v17 }
  0x92   :  { %1705 = vmatpush3.bf16.msra.mxu0 %v2250_v18 }
  0x93   :  { %1706 = vmatprep.subr.bf16.mxu0 %v2254_v21 }
  0x96   :  { %1707 = vmatpush3.bf16.msra.mxu0 %v2256_v22 }
  0x97   :  { %1708 = vmatprep.subr.bf16.mxu0 %v2258_v24 }
  0x9a   :  { %1709 = vmatpush3.bf16.msra.mxu0 %v2268_v30 }
 0x11d   :  { %v2307_v50 = vpop.f32.mrf.mxu0 }
 0x11e   :  { %v512_v38 = vadd.f32 %v2307_v50, %v2272_v35 }
 0x11f   :  { %v1653_v51 = vpop.f32.mrf.mxu1  ;;  %v2309_v53 = vpop.f32.mrf.mxu0 }
 0x120   :  { %v510_v19 = vadd.f32 %v2272_v35, %v2309_v53 }
 0x121   :  { %v1654_v52 = vpop.f32.mrf.mxu1  ;;  %v2311_v56 = vpop.f32.mrf.mxu0 }
 0x122   :  { %v1655_v20 = vadd.f32 %v1654_v52, %v1653_v51  ;;  %v513_v42 = vadd.f32 %v2311_v56, %v2272_v35 }
 0x123   :  { %v1656_v54 = vpop.f32.mrf.mxu1  ;;  %v2313_v59 = vpop.f32.mrf.mxu0 }
 0x124   :  { %v511_v25 = vadd.f32 %v2272_v35, %v2313_v59  ;;  %v518_v40 = vsub.f32 %v510_v19, %v1655_v20 }
 0x125   :  { %v1657_v55 = vpop.f32.mrf.mxu1  ;;  %v2315_v61 = vpop.f32.mrf.mxu0 }
 0x126   :  { %v1658_v27 = vadd.f32 %v1657_v55, %v1656_v54  ;;  %v516_v43 = vadd.f32 %v2315_v61, %v2272_v35 }
 0x127   :  { %v1659_v57 = vpop.f32.mrf.mxu1  ;;  %v2317_v0 = vpop.f32.mrf.mxu0 }
 0x128   :  { %v514_v29 = vadd.f32 %v2272_v35, %v2317_v0  ;;  %v519_v46 = vsub.f32 %v511_v25, %v1658_v27 }
 0x129   :  { %v1660_v58 = vpop.f32.mrf.mxu1  ;;  %v2319_v9 = vpop.f32.mrf.mxu0 }
 0x12a   :  { %v1661_v28 = vadd.f32 %v1660_v58, %v1659_v57  ;;  %v517_v54 = vadd.f32 %v2319_v9, %v2272_v35 }
 0x12b   :  { %v1662_v60 = vpop.f32.mrf.mxu1  ;;  %v2321_v16 = vpop.f32.mrf.mxu0 }
 0x12c   :  { %v515_v34 = vadd.f32 %v2272_v35, %v2321_v16  ;;  %v520_v47 = vsub.f32 %v512_v38, %v1661_v28 }
 0x12d   :  { %v1663_v62 = vpop.f32.mrf.mxu1 }
 0x12e   :  { %v1664_v31 = vadd.f32 %v1663_v62, %v1662_v60 }
 0x12f   :  { %v1665_v63 = vpop.f32.mrf.mxu1 }
 0x130   :  { %v521_v51 = vsub.f32 %v513_v42, %v1664_v31 }
 0x131   :  { %v1666_v3 = vpop.f32.mrf.mxu1 }
 0x132   :  { %v1667_v32 = vadd.f32 %v1666_v3, %v1665_v63 }
 0x133   :  { %v1668_v6 = vpop.f32.mrf.mxu1 }
 0x134   :  { %v522_v52 = vsub.f32 %v514_v29, %v1667_v32 }
 0x135   :  { %v1669_v12 = vpop.f32.mrf.mxu1 }
 0x136   :  { %v1670_v33 = vadd.f32 %v1669_v12, %v1668_v6 }
 0x137   :  { %v1671_v15 = vpop.f32.mrf.mxu1 }
 0x138   :  { %v523_v55 = vsub.f32 %v515_v34, %v1670_v33 }
 0x139   :  { %v1672_v23 = vpop.f32.mrf.mxu1 }
 0x13a   :  { %v1673_v39 = vadd.f32 %v1672_v23, %v1671_v15 }
 0x13b   :  { %v1674_v36 = vpop.f32.mrf.mxu1 }
 0x13c   :  { %v524_v58 = vsub.f32 %v516_v43, %v1673_v39 }
 0x13d   :  { %v1675_v44 = vpop.f32.mrf.mxu1  ;;  %v504_v45 = vpop.f32.mrf.mxu0 }
 0x13e   :  { %v1676_v48 = vadd.f32 %v1675_v44, %v1674_v36  ;;  %v529_v49 = vrot.slane %v504_v45, %v2261_v26 }
 0x13f   :  { %v1842_v57 = vpop.f32.mrf.mxu0 }
 0x140   :  { %v530_v60 = vadd.f32 %v529_v49, %v518_v40  ;;  %v531_v62 = vadd.f32 %v529_v49, %v519_v46  ;;  %v532_v63 = vadd.f32 %v529_v49, %v520_v47  ;;  %v525_v3 = vsub.f32 %v517_v54, %v1676_v48 }
 0x141   :  { %v507_v6 = vpop.f32.mrf.mxu0  ;;  %v533_v12 = vadd.f32 %v529_v49, %v521_v51  ;;  %v534_v15 = vadd.f32 %v529_v49, %v522_v52  ;;  %v535_v23 = vadd.f32 %v529_v49, %v523_v55  ;;  %v536_v25 = vadd.f32 %v529_v49, %v524_v58 }
 0x142   :  { %v1556_v19 = vadd.f32 -0.5, %v530_v60  ;;  %v1557_v20 = vadd.f32 -0.5, %v531_v62  ;;  %vm554_vm3 = vcmp.lt.f32.partialorder %v530_v60, -0.5  ;;  %vm555_vm4 = vcmp.lt.f32.partialorder %v531_v62, -0.5 }
 0x143   :  { %v1843_v27 = vpop.f32.mrf.mxu0  ;;  %v562_v28 = vadd.f32 0.5, %v530_v60  ;;  %v563_v29 = vadd.f32 0.5, %v531_v62  ;;  %vm538_vm5 = vcmp.gt.f32.partialorder %v530_v60, 0.5  ;;  %vm539_vm6 = vcmp.gt.f32.partialorder %v531_v62, 0.5 }
 0x144   :  { %v1558_v35 = vadd.f32 -0.5, %v532_v63  ;;  %v1559_v31 = vadd.f32 -0.5, %v533_v12  ;;  %vm556_vm7 = vcmp.lt.f32.partialorder %v532_v63, -0.5  ;;  %vm557_vm8 = vcmp.lt.f32.partialorder %v533_v12, -0.5  ;;  %v1565_v27 = vld [vmem:[%s2545_s2 + $0x1] ss:$0 sm:$0xff] }
 0x145   :  { %v570_v32 = vsel %vm554_vm3, %v562_v28, 0.0  ;;  %v571_v33 = vsel %vm555_vm4, %v563_v29, 0.0  ;;  %v564_v38 = vadd.f32 0.5, %v532_v63  ;;  %v565_v39 = vadd.f32 0.5, %v533_v12 }
 0x146   :  { %v2340_v34 = vsel %vm538_vm5, %v1556_v19, %v570_v32  ;;  %v2342_v36 = vsel %vm539_vm6, %v1557_v20, %v571_v33  ;;  %vm540_vm9 = vcmp.gt.f32.partialorder %v532_v63, 0.5  ;;  %vm541_vm10 = vcmp.gt.f32.partialorder %v533_v12, 0.5 }
 0x147   :  { %v588_v40 = vpack.c.bf16 %v2342_v36, %v2340_v34  ;;  %v1560_v42 = vadd.f32 -0.5, %v534_v15  ;;  %v572_v43 = vsel %vm556_vm7, %v564_v38, 0.0  ;;  %v573_v44 = vsel %vm557_vm8, %v565_v39, 0.0 }
 0x148   :  { %v1561_v45 = vadd.f32 -0.5, %v535_v23  ;;  %vm558_vm11 = vcmp.lt.f32.partialorder %v534_v15, -0.5  ;;  %v2346_v46 = vsel %vm540_vm9, %v1558_v35, %v572_v43  ;;  %v2348_v47 = vsel %vm541_vm10, %v1559_v31, %v573_v44 }
 0x149   :  { %1860 = vmatprep.mubr.bf16.mxu1 %v588_v40  ;;  %vm559_vm12 = vcmp.lt.f32.partialorder %v535_v23, -0.5  ;;  %v566_v48 = vadd.f32 0.5, %v534_v15  ;;  %v589_v51 = vpack.c.bf16 %v2348_v47, %v2346_v46  ;;  %vm542_vm13 = vcmp.gt.f32.partialorder %v534_v15, 0.5 }
 0x14a   :  { %v567_v52 = vadd.f32 0.5, %v535_v23  ;;  %v537_v54 = vadd.f32 %v529_v49, %v525_v3  ;;  %v1562_v57 = vadd.f32 -0.5, %v536_v25  ;;  %vm560_vm14 = vcmp.lt.f32.partialorder %v536_v25, -0.5 }
 0x14b   :  { %v574_v55 = vsel %vm558_vm11, %v566_v48, 0.0  ;;  %v568_v58 = vadd.f32 0.5, %v536_v25  ;;  %1861 = vmatmul.mubr.bf16.vlgmr.msra.gmra.mxu1 %v589_v51  ;;  %vm543_vm15 = vcmp.gt.f32.partialorder %v535_v23, 0.5  ;;  %vm544_vm1 = vcmp.gt.f32.partialorder %v536_v25, 0.5 }
 0x14c   :  { %v575_v60 = vsel %vm559_vm12, %v567_v52, 0.0  ;;  %v2352_v62 = vsel %vm542_vm13, %v1560_v42, %v574_v55  ;;  %v1563_v63 = vadd.f32 -0.5, %v537_v54  ;;  %vm561_vm0 = vcmp.lt.f32.partialorder %v537_v54, -0.5 }
 0x14d   :  { %v2354_v6 = vsel %vm543_vm15, %v1561_v45, %v575_v60  ;;  %v569_v12 = vadd.f32 0.5, %v537_v54  ;;  %v576_v19 = vsel %vm560_vm14, %v568_v58, 0.0  ;;  %vm545_vm3 = vcmp.gt.f32.partialorder %v537_v54, 0.5 }
 0x14e   :  { %v590_v15 = vpack.c.bf16 %v2354_v6, %v2352_v62  ;;  %v2358_v3 = vsel %vm544_vm1, %v1562_v57, %v576_v19 }
 0x14f   :  { %v577_v49 = vsel %vm561_vm0, %v569_v12, 0.0 }
 0x150   :  { %1864 = vmatprep.mubr.bf16.mxu1 %v590_v15  ;;  %v2360_v20 = vsel %vm545_vm3, %v1563_v63, %v577_v49 }
 0x151   :  { %v591_v23 = vpack.c.bf16 %v2360_v20, %v2358_v3 }
 0x153   :  { %1865 = vmatmul.mubr.bf16.gmra.mxu1 %v591_v23 }
 0x154   :  { %1876 = vmatprep.mubr.msk.bf16.mxu1 %vm2140_vm2, %v2139_v37 }
 0x20b   :  { %v1862_v28 = vpop.f32.mrf.mxu1 }
 0x20c   :  { %v706_v25 = vadd.f32 %v1862_v28, %v1565_v27 }
 0x20d   :  { %v697_v29 = vpop.f32.mrf.mxu1 }
 0x20e   :  { %v698_v35 = vadd.f32 %v1565_v27, %v697_v29  ;;  %v754_v32 = vadd.f32 0.5, %v706_v25  ;;  %vm746_vm4 = vcmp.lt.f32.partialorder %v706_v25, -0.5  ;;  %v1576_v45 = vadd.f32 -0.5, %v706_v25 }
 0x20f   :  { %v1863_v31 = vpop.f32.mrf.mxu1  ;;  %vm730_vm12 = vcmp.gt.f32.partialorder %v706_v25, 0.5 }
 0x210   :  { %v709_v33 = vadd.f32 %v1863_v31, %v1565_v27  ;;  %vm744_vm5 = vcmp.lt.f32.partialorder %v698_v35, -0.5  ;;  %v752_v38 = vadd.f32 0.5, %v698_v35  ;;  %v1574_v42 = vadd.f32 -0.5, %v698_v35 }
 0x211   :  { %v700_v39 = vpop.f32.mrf.mxu1  ;;  %v762_v48 = vsel %vm746_vm4, %v754_v32, 0.0  ;;  %vm728_vm8 = vcmp.gt.f32.partialorder %v698_v35, 0.5 }
 0x212   :  { %v755_v40 = vadd.f32 0.5, %v709_v33  ;;  %vm747_vm6 = vcmp.lt.f32.partialorder %v709_v33, -0.5  ;;  %v701_v43 = vadd.f32 %v1565_v27, %v700_v39  ;;  %v760_v51 = vsel %vm744_vm5, %v752_v38, 0.0 }
 0x213   :  { %v1866_v44 = vpop.f32.mrf.mxu1  ;;  %v1577_v54 = vadd.f32 -0.5, %v709_v33  ;;  %vm731_vm10 = vcmp.gt.f32.partialorder %v709_v33, 0.5  ;;  %v2369_v15 = vsel %vm728_vm8, %v1574_v42, %v760_v51  ;;  %v2375_v39 = vsel %vm730_vm12, %v1576_v45, %v762_v48 }
 0x214   :  { %v722_v52 = vadd.f32 %v1866_v44, %v1565_v27  ;;  %v1575_v55 = vadd.f32 -0.5, %v701_v43  ;;  %vm745_vm7 = vcmp.lt.f32.partialorder %v701_v43, -0.5  ;;  %v753_v57 = vadd.f32 0.5, %v701_v43 }
 0x215   :  { %v713_v58 = vpop.f32.mrf.mxu1  ;;  %v763_v60 = vsel %vm747_vm6, %v755_v40, 0.0  ;;  %vm729_vm11 = vcmp.gt.f32.partialorder %v701_v43, 0.5  ;;  %v776_v42 = vsub.f32 %v2340_v34, %v2369_v15  ;;  %v778_v34 = vsub.f32 %v2346_v46, %v2375_v39 }
 0x216   :  { %vm750_vm9 = vcmp.lt.f32.partialorder %v722_v52, -0.5  ;;  %v758_v63 = vadd.f32 0.5, %v722_v52  ;;  %v761_v12 = vsel %vm745_vm7, %v753_v57, 0.0  ;;  %v1580_v49 = vadd.f32 -0.5, %v722_v52 }
 0x217   :  { %v1867_v19 = vpop.f32.mrf.mxu1  ;;  %v714_v23 = vadd.f32 %v1565_v27, %v713_v58  ;;  %v2371_v29 = vsel %vm729_vm11, %v1575_v55, %v761_v12  ;;  %v2373_v38 = vsel %vm731_vm10, %v1577_v54, %v763_v60  ;;  %vm734_vm13 = vcmp.gt.f32.partialorder %v722_v52, 0.5 }
 0x218   :  { %v725_v28 = vadd.f32 %v1867_v19, %v1565_v27  ;;  %v766_v31 = vsel %vm750_vm9, %v758_v63, 0.0  ;;  %v777_v43 = vsub.f32 %v2342_v36, %v2371_v29  ;;  %v779_v51 = vsub.f32 %v2348_v47, %v2373_v38 }
 0x219   :  { %v716_v32 = vpop.f32.mrf.mxu1  ;;  %v2381_v44 = vsel %vm734_vm13, %v1580_v49, %v766_v31  ;;  %vm748_vm15 = vcmp.lt.f32.partialorder %v714_v23, -0.5  ;;  %v756_v25 = vadd.f32 0.5, %v714_v23  ;;  %v1578_v55 = vadd.f32 -0.5, %v714_v23 }
 0x21a   :  { %v1581_v35 = vadd.f32 -0.5, %v725_v28  ;;  %vm751_vm14 = vcmp.lt.f32.partialorder %v725_v28, -0.5  ;;  %v759_v33 = vadd.f32 0.5, %v725_v28  ;;  %v717_v40 = vadd.f32 %v1565_v27, %v716_v32 }
 0x21b   :  { %vm735_vm0 = vcmp.gt.f32.partialorder %v725_v28, 0.5  ;;  %v784_v48 = vpack.c.bf16 %v777_v43, %v776_v42  ;;  %v788_v36 = vpack.c.bf16 %v2371_v29, %v2369_v15  ;;  %v782_v57 = vsub.f32 %v2358_v3, %v2381_v44 }
 0x21c   :  { %v767_v52 = vsel %vm751_vm14, %v759_v33, 0.0  ;;  %v1579_v54 = vadd.f32 -0.5, %v717_v40  ;;  %vm749_vm1 = vcmp.lt.f32.partialorder %v717_v40, -0.5  ;;  %v757_v27 = vadd.f32 0.5, %v717_v40 }
 0x21d   :  { %v2385_v45 = vsel %vm735_vm0, %v1581_v35, %v767_v52  ;;  %v764_v58 = vsel %vm748_vm15, %v756_v25, 0.0  ;;  %vm733_vm3 = vcmp.gt.f32.partialorder %v717_v40, 0.5  ;;  %824 = vmatprep.mubr.bf16.mxu0 %v784_v48  ;;  %v785_v63 = vpack.c.bf16 %v779_v51, %v778_v34 }
 0x21e   :  { %v783_v47 = vsub.f32 %v2360_v20, %v2385_v45  ;;  %v765_v60 = vsel %vm749_vm1, %v757_v27, 0.0  ;;  %825 = vmatmul.mubr.bf16.vlgmr.msra.gmra.mxu0 %v788_v36  ;;  %vm732_vm4 = vcmp.gt.f32.partialorder %v714_v23, 0.5  ;;  %v789_v49 = vpack.c.bf16 %v2373_v38, %v2375_v39 }
 0x21f   :  { %v2395_v19 = vsel %vm733_vm3, %v1579_v54, %v765_v60  ;;  %832 = vmatprep.mubr.bf16.mxu0 %v785_v63  ;;  %v2397_v46 = vsel %vm732_vm4, %v1578_v55, %v764_v58  ;;  %v897_v25 = vadd.f32 %v2369_v15, %v2309_v53  ;;  %v900_v58 = vadd.f32 %v2311_v56, %v2373_v38 }
 0x220   :  { %v787_v12 = vpack.c.bf16 %v783_v47, %v782_v57  ;;  %v781_v3 = vsub.f32 %v2354_v6, %v2395_v19  ;;  %v780_v20 = vsub.f32 %v2352_v62, %v2397_v46  ;;  %v790_v23 = vpack.c.bf16 %v2395_v19, %v2397_v46 }
 0x221   :  { %v791_v62 = vpack.c.bf16 %v2385_v45, %v2381_v44  ;;  %v898_v57 = vadd.f32 %v2371_v29, %v2313_v59  ;;  %v899_v47 = vadd.f32 %v2307_v50, %v2375_v39  ;;  %v901_v15 = vadd.f32 %v2397_v46, %v2317_v0 }
 0x222   :  { %1869 = vmatpush3.bf16.xpose.msra.mxu1 %v787_v12  ;;  %v786_v28 = vpack.c.bf16 %v781_v3, %v780_v20  ;;  %v904_v3 = vadd.f32 %v2319_v9, %v2385_v45 }
 0x223   :  { %1870 = vmatprep.subr.bf16.mxu1 %v2139_v37 }
 0x226   :  { %833 = vmatmul.mubr.bf16.gmra.mxu0 %v789_v49 }
 0x227   :  { %840 = vmatprep.mubr.bf16.mxu0 %v786_v28 }
 0x22a   :  { %1871 = vmatpush3.bf16.xpose.msra.mxu1 %v786_v28 }
 0x22b   :  { %1872 = vmatprep.subr.bf16.mxu1 %v2139_v37 }
 0x22e   :  { %841 = vmatmul.mubr.bf16.gmra.mxu0 %v790_v23 }
 0x22f   :  { %848 = vmatprep.mubr.bf16.mxu0 %v787_v12  ;;  %v903_v12 = vadd.f32 %v2315_v61, %v2381_v44 }
 0x232   :  { %1873 = vmatpush3.bf16.xpose.msra.mxu1 %v785_v63  ;;  %v902_v63 = vadd.f32 %v2395_v19, %v2321_v16 }
 0x233   :  { %1874 = vmatprep.subr.bf16.mxu1 %v2139_v37 }
 0x236   :  { %849 = vmatmul.mubr.bf16.gmra.mxu0 %v791_v62 }
 0x23a   :  { %1875 = vmatpush3.bf16.xpose.msra.mxu1 %v784_v48 }
 0x23b   :  { %1751 = vmatprep.subr.bf16.mxu1 %v2219_v1  ;;  %v1988_v1 = vld [vmem:[#allocation5 + $0xb8] sm:$0xff]  }
 0x23c   :  { %1880 = vmatprep.subr.bf16.mxu0 %v1988_v1 }
 0x23d   :  { %1881 = vmatpush3.bf16.msra.mxu0 %v1988_v1 }
 0x241   :  { %1877 = vmatmul.mubr.bf16.vlgmr.msra.gmra.mxu1 %v2288_v41 }
 0x242   :  { %1752 = vmatpush3.bf16.msra.mxu1 %v2221_v2  ;;  %v1989_v2 = vld [vmem:[#allocation5 + $0xb0] sm:$0xff]  }
 0x243   :  { %1753 = vmatprep.subr.bf16.mxu1 %v2225_v4  ;;  %1882 = vmatprep.subr.bf16.mxu0 %v1989_v2  ;;  %v1990_v4 = vld [vmem:[#allocation5 + $0xa8] sm:$0xff]  }
 0x244   :  { %1883 = vmatpush3.bf16.msra.mxu0 %v1989_v2 }
 0x245   :  { %1884 = vmatprep.subr.bf16.mxu0 %v1990_v4 }
 0x246   :  { %1754 = vmatpush3.bf16.msra.mxu1 %v2227_v5  ;;  %v1991_v5 = vld [vmem:[#allocation5 + $0xa0] sm:$0xff]  }
 0x247   :  { %1755 = vmatprep.subr.bf16.mxu1 %v2230_v7  ;;  %v1992_v7 = vld [vmem:[#allocation5 + $0x98] sm:$0xff]  }
 0x248   :  { %1885 = vmatpush3.bf16.msra.mxu0 %v1990_v4 }
 0x249   :  { %1886 = vmatprep.subr.bf16.mxu0 %v1991_v5 }
 0x24a   :  { %1756 = vmatpush3.bf16.msra.mxu1 %v2233_v8  ;;  %v1993_v8 = vld [vmem:[#allocation5 + $0x90] sm:$0xff]  }
 0x24b   :  { %1757 = vmatprep.subr.bf16.mxu1 %v2236_v10  ;;  %v1994_v10 = vld [vmem:[#allocation5 + $0x88] sm:$0xff]  }
 0x24c   :  { %1887 = vmatpush3.bf16.msra.mxu0 %v1991_v5 }
 0x24d   :  { %1888 = vmatprep.subr.bf16.mxu0 %v1992_v7 }
 0x24e   :  { %1758 = vmatpush3.bf16.msra.mxu1 %v2238_v11  ;;  %v1995_v11 = vld [vmem:[#allocation5 + $0x80] sm:$0xff]  }
 0x24f   :  { %1759 = vmatprep.subr.bf16.mxu1 %v2242_v13 }
 0x250   :  { %1889 = vmatpush3.bf16.msra.mxu0 %v1992_v7 }
 0x251   :  { %1890 = vmatprep.subr.bf16.mxu0 %v1993_v8 }
 0x252   :  { %1760 = vmatpush3.bf16.msra.mxu1 %v2244_v14 }
 0x253   :  { %1761 = vmatprep.subr.bf16.mxu1 %v2248_v17 }
 0x254   :  { %1891 = vmatpush3.bf16.msra.mxu0 %v1993_v8 }
 0x255   :  { %1892 = vmatprep.subr.bf16.mxu0 %v1994_v10 }
 0x256   :  { %1762 = vmatpush3.bf16.msra.mxu1 %v2250_v18 }
 0x257   :  { %1763 = vmatprep.subr.bf16.mxu1 %v2254_v21 }
 0x258   :  { %1893 = vmatpush3.bf16.msra.mxu0 %v1994_v10 }
 0x259   :  { %1894 = vmatprep.subr.bf16.mxu0 %v1995_v11 }
 0x25a   :  { %1764 = vmatpush3.bf16.msra.mxu1 %v2256_v22 }
 0x25b   :  { %1765 = vmatprep.subr.bf16.mxu1 %v2258_v24 }
 0x25c   :  { %1895 = vmatpush3.bf16.msra.mxu0 %v1995_v11 }
 0x25d   :  { %1904 = vmatprep.subr.bf16.mxu0 %v2139_v37 }
 0x25e   :  { %1766 = vmatpush3.bf16.msra.mxu1 %v2268_v30 }
 0x2de   :  { %v1710_v13 = vpop.f32.mrf.mxu0 }
 0x2e0   :  { %v1711_v14 = vpop.f32.mrf.mxu0 }
 0x2e1   :  { %v1712_v43 = vadd.f32 %v1711_v14, %v1710_v13 }
 0x2e2   :  { %v1713_v17 = vpop.f32.mrf.mxu0 }
 0x2e3   :  { %v905_v60 = vsub.f32 %v897_v25, %v1712_v43 }
 0x2e4   :  { %v1714_v18 = vpop.f32.mrf.mxu0 }
 0x2e5   :  { %v1715_v51 = vadd.f32 %v1714_v18, %v1713_v17 }
 0x2e6   :  { %v1716_v21 = vpop.f32.mrf.mxu0 }
 0x2e7   :  { %v906_v20 = vsub.f32 %v898_v57, %v1715_v51 }
 0x2e8   :  { %v1717_v22 = vpop.f32.mrf.mxu0 }
 0x2e9   :  { %v1718_v52 = vadd.f32 %v1717_v22, %v1716_v21 }
 0x2ea   :  { %v1719_v24 = vpop.f32.mrf.mxu0 }
 0x2eb   :  { %v907_v49 = vsub.f32 %v899_v47, %v1718_v52 }
 0x2ec   :  { %v1720_v30 = vpop.f32.mrf.mxu0 }
 0x2ed   :  { %v1721_v54 = vadd.f32 %v1720_v30, %v1719_v24 }
 0x2ee   :  { %v1722_v6 = vpop.f32.mrf.mxu0 }
 0x2ef   :  { %v908_v39 = vsub.f32 %v900_v58, %v1721_v54 }
 0x2f0   :  { %v1723_v31 = vpop.f32.mrf.mxu0 }
 0x2f1   :  { %v1724_v48 = vadd.f32 %v1723_v31, %v1722_v6 }
 0x2f2   :  { %v1725_v32 = vpop.f32.mrf.mxu0 }
 0x2f3   :  { %v909_v38 = vsub.f32 %v901_v15, %v1724_v48 }
 0x2f4   :  { %v1726_v35 = vpop.f32.mrf.mxu0 }
 0x2f5   :  { %v1727_v34 = vadd.f32 %v1726_v35, %v1725_v32 }
 0x2f6   :  { %v1728_v33 = vpop.f32.mrf.mxu0 }
 0x2f7   :  { %v910_v23 = vsub.f32 %v902_v63, %v1727_v34 }
 0x2f8   :  { %v1729_v40 = vpop.f32.mrf.mxu0 }
 0x2f9   :  { %v1730_v55 = vadd.f32 %v1729_v40, %v1728_v33 }
 0x2fa   :  { %v1731_v42 = vpop.f32.mrf.mxu0 }
 0x2fb   :  { %v911_v62 = vsub.f32 %v903_v12, %v1730_v55 }
 0x2fc   :  { %v1732_v27 = vpop.f32.mrf.mxu0 }
 0x2fd   :  { %v1733_v36 = vadd.f32 %v1732_v27, %v1731_v42 }
 0x2ff   :  { %v912_v46 = vsub.f32 %v904_v3, %v1733_v36 }
 0x301   :  { %v891_v29 = vpop.f32.mrf.mxu1 }
 0x302   :  { %v916_v28 = vrot.slane %v891_v29, %v2261_v26 }
 0x303   :  { %v1878_v1 = vpop.f32.mrf.mxu1 }
 0x304   :  { %v917_v2 = vadd.f32 %v916_v28, %v905_v60  ;;  %v918_v4 = vadd.f32 %v916_v28, %v906_v20  ;;  %v919_v19 = vadd.f32 %v916_v28, %v907_v49  ;;  %v920_v5 = vadd.f32 %v916_v28, %v908_v39  ;;  %v1591_v39 = vld [vmem:[%s2545_s2 + $0x2] ss:$0 sm:$0xff] }
 0x305   :  { %v894_v7 = vpop.f32.mrf.mxu1  ;;  %v921_v44 = vadd.f32 %v916_v28, %v909_v38  ;;  %v922_v8 = vadd.f32 %v916_v28, %v910_v23  ;;  %v923_v11 = vadd.f32 %v916_v28, %v911_v62  ;;  %v924_v13 = vadd.f32 %v916_v28, %v912_v46 }
 0x306   :  { %v1582_v10 = vadd.f32 -0.5, %v917_v2  ;;  %v1583_v45 = vadd.f32 -0.5, %v918_v4  ;;  %vm941_vm5 = vcmp.lt.f32.partialorder %v917_v2, -0.5  ;;  %vm942_vm6 = vcmp.lt.f32.partialorder %v918_v4, -0.5 }
 0x307   :  { %v1879_v14 = vpop.f32.mrf.mxu1  ;;  %v949_v17 = vadd.f32 0.5, %v917_v2  ;;  %v950_v18 = vadd.f32 0.5, %v918_v4  ;;  %vm925_vm7 = vcmp.gt.f32.partialorder %v917_v2, 0.5  ;;  %vm926_vm8 = vcmp.gt.f32.partialorder %v918_v4, 0.5 }
 0x308   :  { %v1584_v21 = vadd.f32 -0.5, %v919_v19  ;;  %v1585_v22 = vadd.f32 -0.5, %v920_v5  ;;  %vm943_vm9 = vcmp.lt.f32.partialorder %v919_v19, -0.5  ;;  %vm944_vm10 = vcmp.lt.f32.partialorder %v920_v5, -0.5 }
 0x309   :  { %v957_v24 = vsel %vm941_vm5, %v949_v17, 0.0  ;;  %v958_v30 = vsel %vm942_vm6, %v950_v18, 0.0  ;;  %v951_v32 = vadd.f32 0.5, %v919_v19  ;;  %v952_v35 = vadd.f32 0.5, %v920_v5 }
 0x30a   :  { %v2447_v6 = vsel %vm925_vm7, %v1582_v10, %v957_v24  ;;  %v2449_v31 = vsel %vm926_vm8, %v1583_v45, %v958_v30  ;;  %vm927_vm11 = vcmp.gt.f32.partialorder %v919_v19, 0.5  ;;  %vm928_vm12 = vcmp.gt.f32.partialorder %v920_v5, 0.5 }
 0x30b   :  { %v975_v33 = vpack.c.bf16 %v2449_v31, %v2447_v6  ;;  %v1586_v40 = vadd.f32 -0.5, %v921_v44  ;;  %v959_v42 = vsel %vm943_vm9, %v951_v32, 0.0  ;;  %v960_v43 = vsel %vm944_vm10, %v952_v35, 0.0 }
 0x30c   :  { %v1587_v25 = vadd.f32 -0.5, %v922_v8  ;;  %vm945_vm13 = vcmp.lt.f32.partialorder %v921_v44, -0.5  ;;  %v2453_v51 = vsel %vm927_vm11, %v1584_v21, %v959_v42  ;;  %v2455_v52 = vsel %vm928_vm12, %v1585_v22, %v960_v43 }
 0x30d   :  { %1896 = vmatprep.mubr.bf16.mxu0 %v975_v33  ;;  %vm946_vm14 = vcmp.lt.f32.partialorder %v922_v8, -0.5  ;;  %v953_v54 = vadd.f32 0.5, %v921_v44  ;;  %v976_v27 = vpack.c.bf16 %v2455_v52, %v2453_v51  ;;  %vm929_vm15 = vcmp.gt.f32.partialorder %v921_v44, 0.5 }
 0x30e   :  { %vm930_vm0 = vcmp.gt.f32.partialorder %v922_v8, 0.5  ;;  %v954_v48 = vadd.f32 0.5, %v922_v8  ;;  %v1588_v55 = vadd.f32 -0.5, %v923_v11  ;;  %v1589_v36 = vadd.f32 -0.5, %v924_v13 }
 0x30f   :  { %v961_v34 = vsel %vm945_vm13, %v953_v54, 0.0  ;;  %vm947_vm1 = vcmp.lt.f32.partialorder %v923_v11, -0.5  ;;  %1897 = vmatmul.mubr.bf16.vlgmr.msra.gmra.mxu0 %v976_v27  ;;  %vm948_vm3 = vcmp.lt.f32.partialorder %v924_v13, -0.5  ;;  %v955_v58 = vadd.f32 0.5, %v923_v11 }
 0x310   :  { %v962_v57 = vsel %vm946_vm14, %v954_v48, 0.0  ;;  %v2459_v47 = vsel %vm929_vm15, %v1586_v40, %v961_v34  ;;  %v956_v60 = vadd.f32 0.5, %v924_v13  ;;  %vm931_vm4 = vcmp.gt.f32.partialorder %v923_v11, 0.5 }
 0x311   :  { %v2461_v15 = vsel %vm930_vm0, %v1587_v25, %v962_v57  ;;  %v963_v12 = vsel %vm947_vm1, %v955_v58, 0.0  ;;  %vm932_vm5 = vcmp.gt.f32.partialorder %v924_v13, 0.5 }
 0x312   :  { %v977_v63 = vpack.c.bf16 %v2461_v15, %v2459_v47  ;;  %v964_v3 = vsel %vm948_vm3, %v956_v60, 0.0  ;;  %v2465_v29 = vsel %vm931_vm4, %v1588_v55, %v963_v12 }
 0x313   :  { %v2467_v20 = vsel %vm932_vm5, %v1589_v36, %v964_v3 }
 0x314   :  { %1900 = vmatprep.mubr.bf16.mxu0 %v977_v63  ;;  %v978_v49 = vpack.c.bf16 %v2467_v20, %v2465_v29 }
 0x317   :  { %1901 = vmatmul.mubr.bf16.gmra.mxu0 %v978_v49 }
 0x318   :  { %1912 = vmatprep.mubr.msk.bf16.mxu0 %vm2140_vm2, %v2139_v37 }
 0x3cf   :  { %v1898_v28 = vpop.f32.mrf.mxu0 }
 0x3d0   :  { %v1093_v38 = vadd.f32 %v1898_v28, %v1591_v39 }
 0x3d1   :  { %v1084_v23 = vpop.f32.mrf.mxu0 }
 0x3d2   :  { %v1085_v62 = vadd.f32 %v1591_v39, %v1084_v23  ;;  %v1141_v1 = vadd.f32 0.5, %v1093_v38  ;;  %vm1133_vm6 = vcmp.lt.f32.partialorder %v1093_v38, -0.5  ;;  %v1602_v10 = vadd.f32 -0.5, %v1093_v38 }
 0x3d3   :  { %v1899_v46 = vpop.f32.mrf.mxu0  ;;  %vm1117_vm13 = vcmp.gt.f32.partialorder %v1093_v38, 0.5 }
 0x3d4   :  { %v1096_v2 = vadd.f32 %v1899_v46, %v1591_v39  ;;  %vm1131_vm7 = vcmp.lt.f32.partialorder %v1085_v62, -0.5  ;;  %v1139_v4 = vadd.f32 0.5, %v1085_v62  ;;  %v1600_v7 = vadd.f32 -0.5, %v1085_v62 }
 0x3d5   :  { %v1087_v19 = vpop.f32.mrf.mxu0  ;;  %v1149_v45 = vsel %vm1133_vm6, %v1141_v1, 0.0  ;;  %vm1115_vm9 = vcmp.gt.f32.partialorder %v1085_v62, 0.5 }
 0x3d6   :  { %v1142_v5 = vadd.f32 0.5, %v1096_v2  ;;  %vm1134_vm8 = vcmp.lt.f32.partialorder %v1096_v2, -0.5  ;;  %v1088_v44 = vadd.f32 %v1591_v39, %v1087_v19  ;;  %v1147_v11 = vsel %vm1131_vm7, %v1139_v4, 0.0 }
 0x3d7   :  { %v1902_v8 = vpop.f32.mrf.mxu0  ;;  %v1603_v14 = vadd.f32 -0.5, %v1096_v2  ;;  %vm1118_vm11 = vcmp.gt.f32.partialorder %v1096_v2, 0.5  ;;  %v2476_v35 = vsel %vm1115_vm9, %v1600_v7, %v1147_v11  ;;  %v2482_v34 = vsel %vm1117_vm13, %v1602_v10, %v1149_v45  ;;  %v1998_v10 = vld [vmem:[#allocation10 + $0x28] sm:$0xff]   ;;  %v1999_v45 = vld [vmem:[#allocation10 + $0x20] sm:$0xff]   ;;  %v2001_v11 = vld [vmem:[#allocation10 + $0x10] sm:$0xff]  }
 0x3d8   :  { %v1109_v13 = vadd.f32 %v1902_v8, %v1591_v39  ;;  %v1601_v17 = vadd.f32 -0.5, %v1088_v44  ;;  %vm1132_vm2 = vcmp.lt.f32.partialorder %v1088_v44, -0.5  ;;  %v1140_v18 = vadd.f32 0.5, %v1088_v44  ;;  %v1997_v8 = vld [vmem:[#allocation10 + $0x30] sm:$0xff]  }
 0x3d9   :  { %v1100_v21 = vpop.f32.mrf.mxu0  ;;  %v1150_v22 = vsel %vm1134_vm8, %v1142_v5, 0.0  ;;  %vm1116_vm12 = vcmp.gt.f32.partialorder %v1088_v44, 0.5  ;;  %v1163_v57 = vsub.f32 %v2447_v6, %v2476_v35  ;;  %v1165_v6 = vsub.f32 %v2453_v51, %v2482_v34 }
 0x3da   :  { %vm1137_vm10 = vcmp.lt.f32.partialorder %v1109_v13, -0.5  ;;  %v1145_v24 = vadd.f32 0.5, %v1109_v13  ;;  %v1148_v30 = vsel %vm1132_vm2, %v1140_v18, 0.0  ;;  %v1606_v33 = vadd.f32 -0.5, %v1109_v13 }
 0x3db   :  { %v1903_v32 = vpop.f32.mrf.mxu0  ;;  %v1101_v40 = vadd.f32 %v1591_v39, %v1100_v21  ;;  %v2478_v43 = vsel %vm1116_vm12, %v1601_v17, %v1148_v30  ;;  %v2480_v27 = vsel %vm1118_vm11, %v1603_v14, %v1150_v22  ;;  %vm1121_vm14 = vcmp.gt.f32.partialorder %v1109_v13, 0.5  ;;  %v2002_v13 = vld [vmem:[#allocation10 + $0x8] sm:$0xff]  }
 0x3dc   :  { %v1112_v42 = vadd.f32 %v1903_v32, %v1591_v39  ;;  %v1153_v25 = vsel %vm1137_vm10, %v1145_v24, 0.0  ;;  %v1164_v58 = vsub.f32 %v2449_v31, %v2478_v43  ;;  %v1166_v12 = vsub.f32 %v2455_v52, %v2480_v27 }
 0x3dd   :  { %v1103_v54 = vpop.f32.mrf.mxu0  ;;  %v2488_v60 = vsel %vm1121_vm14, %v1606_v33, %v1153_v25  ;;  %vm1135_vm0 = vcmp.lt.f32.partialorder %v1101_v40, -0.5  ;;  %v1143_v63 = vadd.f32 0.5, %v1101_v40  ;;  %v1604_v23 = vadd.f32 -0.5, %v1101_v40 }
 0x3de   :  { %v1607_v48 = vadd.f32 -0.5, %v1112_v42  ;;  %vm1138_vm15 = vcmp.lt.f32.partialorder %v1112_v42, -0.5  ;;  %v1146_v55 = vadd.f32 0.5, %v1112_v42  ;;  %v1104_v36 = vadd.f32 %v1591_v39, %v1103_v54 }
 0x3df   :  { %vm1122_vm1 = vcmp.gt.f32.partialorder %v1112_v42, 0.5  ;;  %v1171_v38 = vpack.c.bf16 %v1164_v58, %v1163_v57  ;;  %v1175_v31 = vpack.c.bf16 %v2478_v43, %v2476_v35  ;;  %v1169_v62 = vsub.f32 %v2465_v29, %v2488_v60 }
 0x3e0   :  { %v1154_v3 = vsel %vm1138_vm15, %v1146_v55, 0.0  ;;  %v1605_v49 = vadd.f32 -0.5, %v1104_v36  ;;  %vm1136_vm3 = vcmp.lt.f32.partialorder %v1104_v36, -0.5  ;;  %v1144_v39 = vadd.f32 0.5, %v1104_v36 }
 0x3e1   :  { %v2492_v28 = vsel %vm1122_vm1, %v1607_v48, %v1154_v3  ;;  %v1151_v46 = vsel %vm1135_vm0, %v1143_v63, 0.0  ;;  %vm1120_vm4 = vcmp.gt.f32.partialorder %v1104_v36, 0.5  ;;  %1211 = vmatprep.mubr.bf16.mxu1 %v1171_v38  ;;  %v1172_v2 = vpack.c.bf16 %v1166_v12, %v1165_v6 }
 0x3e2   :  { %v1170_v52 = vsub.f32 %v2467_v20, %v2492_v28  ;;  %v1152_v1 = vsel %vm1136_vm3, %v1144_v39, 0.0  ;;  %1212 = vmatmul.mubr.bf16.vlgmr.msra.gmra.mxu1 %v1175_v31  ;;  %vm1119_vm5 = vcmp.gt.f32.partialorder %v1101_v40, 0.5  ;;  %v1176_v5 = vpack.c.bf16 %v2480_v27, %v2482_v34 }
 0x3e3   :  { %v2502_v19 = vsel %vm1120_vm4, %v1605_v49, %v1152_v1  ;;  %1219 = vmatprep.mubr.bf16.mxu1 %v1172_v2  ;;  %v2504_v51 = vsel %vm1119_vm5, %v1604_v23, %v1151_v46  ;;  %v1284_v57 = vadd.f32 %v2476_v35, %v2309_v53  ;;  %v1285_v23 = vadd.f32 %v2478_v43, %v2313_v59 }
 0x3e4   :  { %v1174_v4 = vpack.c.bf16 %v1170_v52, %v1169_v62  ;;  %v1168_v29 = vsub.f32 %v2461_v15, %v2502_v19  ;;  %v1167_v20 = vsub.f32 %v2459_v47, %v2504_v51  ;;  %v1177_v44 = vpack.c.bf16 %v2502_v19, %v2504_v51  ;;  %v1996_v15 = vld [vmem:[#allocation10 + $0x38] sm:$0xff]  }
 0x3e5   :  { %v1178_v47 = vpack.c.bf16 %v2492_v28, %v2488_v60  ;;  %1916 = vmatprep.subr.bf16.mxu1 %v1996_v15  ;;  %v1286_v31 = vadd.f32 %v2307_v50, %v2482_v34  ;;  %v1287_v62 = vadd.f32 %v2311_v56, %v2480_v27  ;;  %v1288_v53 = vadd.f32 %v2504_v51, %v2317_v0 }
 0x3e6   :  { %1905 = vmatpush3.bf16.xpose.msra.mxu0 %v1174_v4  ;;  %v1173_v7 = vpack.c.bf16 %v1168_v29, %v1167_v20  ;;  %1917 = vmatpush3.bf16.msra.mxu1 %v1996_v15  ;;  %v1289_v52 = vadd.f32 %v2502_v19, %v2321_v16  ;;  %v1290_v46 = vadd.f32 %v2315_v61, %v2488_v60 }
 0x3e7   :  { %1906 = vmatprep.subr.bf16.mxu0 %v2139_v37  ;;  %1918 = vmatprep.subr.bf16.mxu1 %v1997_v8  ;;  %v1291_v1 = vadd.f32 %v2319_v9, %v2492_v28 }
 0x3ea   :  { %1220 = vmatmul.mubr.bf16.gmra.mxu1 %v1176_v5 }
 0x3eb   :  { %1227 = vmatprep.mubr.bf16.mxu1 %v1173_v7  ;;  %1919 = vmatpush3.bf16.msra.mxu1 %v1997_v8 }
 0x3ec   :  { %1920 = vmatprep.subr.bf16.mxu1 %v1998_v10 }
 0x3ee   :  { %1907 = vmatpush3.bf16.xpose.msra.mxu0 %v1173_v7 }
 0x3ef   :  { %1908 = vmatprep.subr.bf16.mxu0 %v2139_v37  ;;  %1921 = vmatpush3.bf16.msra.mxu1 %v1998_v10 }
 0x3f0   :  { %1922 = vmatprep.subr.bf16.mxu1 %v1999_v45 }
 0x3f2   :  { %1228 = vmatmul.mubr.bf16.gmra.mxu1 %v1177_v44 }
 0x3f3   :  { %1235 = vmatprep.mubr.bf16.mxu1 %v1174_v4  ;;  %1923 = vmatpush3.bf16.msra.mxu1 %v1999_v45 }
 0x3f6   :  { %1909 = vmatpush3.bf16.xpose.msra.mxu0 %v1172_v2 }
 0x3f7   :  { %1910 = vmatprep.subr.bf16.mxu0 %v2139_v37  ;;  %v2000_v37 = vld [vmem:[#allocation10 + $0x18] sm:$0xff]  }
 0x3f8   :  { %1924 = vmatprep.subr.bf16.mxu1 %v2000_v37 }
 0x3f9   :  { %1925 = vmatpush3.bf16.msra.mxu1 %v2000_v37 }
 0x3fa   :  { %1236 = vmatmul.mubr.bf16.gmra.mxu1 %v1178_v47  ;;  %1926 = vmatprep.subr.bf16.mxu1 %v2001_v11 }
 0x3fd   :  { %1927 = vmatpush3.bf16.msra.mxu1 %v2001_v11 }
 0x3fe   :  { %1911 = vmatpush3.bf16.xpose.msra.mxu0 %v1171_v38  ;;  %1928 = vmatprep.subr.bf16.mxu1 %v2002_v13 }
 0x401   :  { %1929 = vmatpush3.bf16.msra.mxu1 %v2002_v13 }
 0x405   :  { %1913 = vmatmul.mubr.bf16.vlgmr.msra.gmra.mxu0 %v2288_v41  ;;  %v2003_v41 = vld [vmem:[#allocation10] sm:$0xff]  }
 0x406   :  { %1930 = vmatprep.subr.bf16.mxu1 %v2003_v41 }
 0x407   :  { %1931 = vmatpush3.bf16.msra.mxu1 %v2003_v41 }
 0x4a2   :  { %v1767_v14 = vpop.f32.mrf.mxu1 }
 0x4a4   :  { %v1768_v17 = vpop.f32.mrf.mxu1 }
 0x4a5   :  { %v1769_v36 = vadd.f32 %v1768_v17, %v1767_v14 }
 0x4a6   :  { %v1770_v18 = vpop.f32.mrf.mxu1 }
 0x4a7   :  { %v1292_v35 = vsub.f32 %v1284_v57, %v1769_v36 }
 0x4a8   :  { %v1771_v21 = vpop.f32.mrf.mxu1 }
 0x4a9   :  { %v1772_v58 = vadd.f32 %v1771_v21, %v1770_v18 }
 0x4aa   :  { %v1773_v22 = vpop.f32.mrf.mxu1 }
 0x4ab   :  { %v1293_v43 = vsub.f32 %v1285_v23, %v1772_v58  ;;  %v1616_v23 = vld [vmem:[%s2550_s7] ss:$0 sm:$0xff]  ;;  %s1513_s7 = sshll.u32 %s2141_s13, 4  ;;  %s1514_s7 = int_to_ptr.vmem [resolvable:$true] %s1513_s7 }
 0x4ac   :  { %v1774_v24 = vpop.f32.mrf.mxu1  ;;  %s2104_s14 = scalar_lea.vmem %s1514_s7, 1024  ;;  %p2109_p12 = scmp.lt.s32.totalorder %s1514_s7, %s1514_s7 }
 0x4ad   :  { %v1775_v63 = vadd.f32 %v1774_v24, %v1773_v22  ;;  %p2105_p11 = scmp.ne.s32.totalorder %s1514_s7, %s2104_s14  ;;  %p2110_p13 = scmp.lt.s32.totalorder %s2104_s14, %s2104_s14 }
 0x4ae   :  { %v1776_v30 = vpop.f32.mrf.mxu1 }
 0x4af   :  { %v1294_v2 = vsub.f32 %v1286_v31, %v1775_v63  ;;  %p2111_p0 = por %p2110_p13, %p2109_p12 }
 0x4b0   :  { %v1777_v32 = vpop.f32.mrf.mxu1 }
 0x4b1   :  { %v1778_v12 = vadd.f32 %v1777_v32, %v1776_v30  ;;  %p2112_p1 = pnand %p2111_p0, %p2105_p11 }
 0x4b2   :  { %v1779_v33 = vpop.f32.mrf.mxu1 }
 0x4b3   :  { %v1295_v50 = vsub.f32 %v1287_v62, %v1778_v12 }
 0x4b4   :  { %v1780_v40 = vpop.f32.mrf.mxu1 }
 0x4b5   :  { %v1781_v49 = vadd.f32 %v1780_v40, %v1779_v33 }
 0x4b6   :  { %v1782_v42 = vpop.f32.mrf.mxu1 }
 0x4b7   :  { %v1296_v56 = vsub.f32 %v1288_v53, %v1781_v49 }
 0x4b8   :  { %v1783_v25 = vpop.f32.mrf.mxu1 }
 0x4b9   :  { %v1784_v39 = vadd.f32 %v1783_v25, %v1782_v42 }
 0x4ba   :  { %v1785_v54 = vpop.f32.mrf.mxu1 }
 0x4bb   :  { %v1297_v27 = vsub.f32 %v1289_v52, %v1784_v39 }
 0x4bc   :  { %v1786_v48 = vpop.f32.mrf.mxu1 }
 0x4bd   :  { %v1787_v38 = vadd.f32 %v1786_v48, %v1785_v54 }
 0x4be   :  { %v1788_v55 = vpop.f32.mrf.mxu1 }
 0x4bf   :  { %v1298_v4 = vsub.f32 %v1290_v46, %v1787_v38 }
 0x4c0   :  { %v1789_v3 = vpop.f32.mrf.mxu1 }
 0x4c1   :  { %v1790_v6 = vadd.f32 %v1789_v3, %v1788_v55 }
 0x4c3   :  { %v1299_v0 = vsub.f32 %v1291_v1, %v1790_v6 }
 0x4c5   :  { %v1278_v59 = vpop.f32.mrf.mxu0 }
 0x4c6   :  { %v1303_v34 = vrot.slane %v1278_v59, %v2261_v26 }
 0x4c7   :  { %v1914_v51 = vpop.f32.mrf.mxu0 }
 0x4c8   :  { %v1304_v29 = vadd.f32 %v1303_v34, %v1292_v35  ;;  %v1305_v20 = vadd.f32 %v1303_v34, %v1293_v43  ;;  %v1306_v16 = vadd.f32 %v1303_v34, %v1294_v2  ;;  %v1307_v19 = vadd.f32 %v1303_v34, %v1295_v50 }
 0x4c9   :  { %v1281_v5 = vpop.f32.mrf.mxu0  ;;  %v1308_v61 = vadd.f32 %v1303_v34, %v1296_v56  ;;  %v1309_v60 = vadd.f32 %v1303_v34, %v1297_v27  ;;  %v1310_v28 = vadd.f32 %v1303_v34, %v1298_v4  ;;  %v1311_v44 = vadd.f32 %v1303_v34, %v1299_v0 }
 0x4ca   :  { %v1608_v7 = vadd.f32 -0.5, %v1304_v29  ;;  %v1609_v9 = vadd.f32 -0.5, %v1305_v20  ;;  %vm1328_vm6 = vcmp.lt.f32.partialorder %v1304_v29, -0.5  ;;  %vm1329_vm7 = vcmp.lt.f32.partialorder %v1305_v20, -0.5 }
 0x4cb   :  { %v1915_v47 = vpop.f32.mrf.mxu0  ;;  %v1336_v26 = vadd.f32 0.5, %v1304_v29  ;;  %v1337_v15 = vadd.f32 0.5, %v1305_v20  ;;  %vm1312_vm8 = vcmp.gt.f32.partialorder %v1304_v29, 0.5  ;;  %vm1313_vm2 = vcmp.gt.f32.partialorder %v1305_v20, 0.5 }
 0x4cc   :  { %v1610_v8 = vadd.f32 -0.5, %v1306_v16  ;;  %v1611_v10 = vadd.f32 -0.5, %v1307_v19  ;;  %vm1330_vm9 = vcmp.lt.f32.partialorder %v1306_v16, -0.5  ;;  %vm1331_vm10 = vcmp.lt.f32.partialorder %v1307_v19, -0.5 }
 0x4cd   :  { %v1344_v45 = vsel %vm1328_vm6, %v1336_v26, 0.0  ;;  %v1345_v37 = vsel %vm1329_vm7, %v1337_v15, 0.0  ;;  %v1338_v41 = vadd.f32 0.5, %v1306_v16  ;;  %v1339_v14 = vadd.f32 0.5, %v1307_v19 }
 0x4ce   :  { %v1352_v11 = vsel %vm1312_vm8, %v1608_v7, %v1344_v45  ;;  %v1353_v13 = vsel %vm1313_vm2, %v1609_v9, %v1345_v37  ;;  %vm1314_vm11 = vcmp.gt.f32.partialorder %v1306_v16, 0.5  ;;  %vm1315_vm12 = vcmp.gt.f32.partialorder %v1307_v19, 0.5 }
 0x4cf   :  { %v1360_v17 = vpack.c.bf16 %v1353_v13, %v1352_v11  ;;  %v1612_v18 = vadd.f32 -0.5, %v1308_v61  ;;  %v1346_v21 = vsel %vm1330_vm9, %v1338_v41, 0.0  ;;  %v1347_v22 = vsel %vm1331_vm10, %v1339_v14, 0.0 }
 0x4d0   :  { %v1613_v24 = vadd.f32 -0.5, %v1309_v60  ;;  %vm1332_vm13 = vcmp.lt.f32.partialorder %v1308_v61, -0.5  ;;  %v1354_v30 = vsel %vm1314_vm11, %v1610_v8, %v1346_v21  ;;  %v1355_v32 = vsel %vm1315_vm12, %v1611_v10, %v1347_v22 }
 0x4d1   :  { %1932 = vmatprep.mubr.bf16.mxu1 %v1360_v17  ;;  %vm1333_vm14 = vcmp.lt.f32.partialorder %v1309_v60, -0.5  ;;  %v1340_v33 = vadd.f32 0.5, %v1308_v61  ;;  %v1361_v40 = vpack.c.bf16 %v1355_v32, %v1354_v30  ;;  %vm1316_vm15 = vcmp.gt.f32.partialorder %v1308_v61, 0.5 }
 0x4d2   :  { %vm1317_vm0 = vcmp.gt.f32.partialorder %v1309_v60, 0.5  ;;  %v1341_v42 = vadd.f32 0.5, %v1309_v60  ;;  %v1614_v54 = vadd.f32 -0.5, %v1310_v28  ;;  %v1615_v48 = vadd.f32 -0.5, %v1311_v44 }
 0x4d3   :  { %v1348_v25 = vsel %vm1332_vm13, %v1340_v33, 0.0  ;;  %vm1334_vm1 = vcmp.lt.f32.partialorder %v1310_v28, -0.5  ;;  %1933 = vmatmul.mubr.bf16.vlgmr.msra.gmra.mxu1 %v1361_v40  ;;  %vm1335_vm3 = vcmp.lt.f32.partialorder %v1311_v44, -0.5  ;;  %v1342_v57 = vadd.f32 0.5, %v1310_v28 }
 0x4d4   :  { %v1349_v55 = vsel %vm1333_vm14, %v1341_v42, 0.0  ;;  %v1356_v36 = vsel %vm1316_vm15, %v1612_v18, %v1348_v25  ;;  %v1343_v63 = vadd.f32 0.5, %v1311_v44  ;;  %vm1318_vm4 = vcmp.gt.f32.partialorder %v1310_v28, 0.5 }
 0x4d5   :  { %v1357_v58 = vsel %vm1317_vm0, %v1613_v24, %v1349_v55  ;;  %v1350_v3 = vsel %vm1334_vm1, %v1342_v57, 0.0  ;;  %vm1319_vm5 = vcmp.gt.f32.partialorder %v1311_v44, 0.5 }
 0x4d6   :  { %v1362_v12 = vpack.c.bf16 %v1357_v58, %v1356_v36  ;;  %v1351_v49 = vsel %vm1335_vm3, %v1343_v63, 0.0  ;;  %v1358_v39 = vsel %vm1318_vm4, %v1614_v54, %v1350_v3 }
 0x4d7   :  { %v1359_v38 = vsel %vm1319_vm5, %v1615_v48, %v1351_v49 }
 0x4d8   :  { %1936 = vmatprep.mubr.bf16.mxu1 %v1362_v12  ;;  %v1363_v6 = vpack.c.bf16 %v1359_v38, %v1358_v39 }
 0x4db   :  { %1937 = vmatmul.mubr.bf16.gmra.mxu1 %v1363_v6 }
 0x593   :  { %v1934_v31 = vpop.f32.mrf.mxu1 }
 0x594   :  { %v1478_v62 = vadd.f32 %v1934_v31, %v1616_v23 }
 0x595   :  { %v1469_v53 = vpop.f32.mrf.mxu1 }
 0x596   :  { %1502 = vst [vmem:[#allocation11 + $0x10] sm:$0xff] %v1478_v62  ;;  %v1470_v35 = vadd.f32 %v1616_v23, %v1469_v53 }
 0x597   :  { %v1935_v52 = vpop.f32.mrf.mxu1 }
 0x598   :  { %1500 = vst [vmem:[#allocation11] sm:$0xff] %v1470_v35  ;;  %v1481_v46 = vadd.f32 %v1935_v52, %v1616_v23 }
 0x599   :  { %v1472_v1 = vpop.f32.mrf.mxu1 }
 0x59a   :  { %1503 = vst [vmem:[#allocation11 + $0x18] sm:$0xff] %v1481_v46  ;;  %v1473_v59 = vadd.f32 %v1616_v23, %v1472_v1 }
 0x59b   :  { %v1938_v43 = vpop.f32.mrf.mxu1 }
 0x59c   :  { %1501 = vst [vmem:[#allocation11 + $0x8] sm:$0xff] %v1473_v59  ;;  %v1494_v2 = vadd.f32 %v1938_v43, %v1616_v23 }
 0x59d   :  { %v1485_v50 = vpop.f32.mrf.mxu1 }
 0x59e   :  { %1506 = vst [vmem:[#allocation11 + $0x30] sm:$0xff] %v1494_v2  ;;  %v1486_v34 = vadd.f32 %v1616_v23, %v1485_v50 }
 0x59f   :  { %v1939_v56 = vpop.f32.mrf.mxu1 }
 0x5a0   :  { %1504 = vst [vmem:[#allocation11 + $0x20] sm:$0xff] %v1486_v34  ;;  %v1497_v27 = vadd.f32 %v1939_v56, %v1616_v23 }
 0x5a1   :  { %v1488_v4 = vpop.f32.mrf.mxu1 }
 0x5a2   :  { %1507 = vst [vmem:[#allocation11 + $0x38] sm:$0xff] %v1497_v27  ;;  %v1489_v0 = vadd.f32 %v1616_v23, %v1488_v4 }
 0x5a4   :  { %1505 = vst [vmem:[#allocation11 + $0x28] sm:$0xff] %v1489_v0 }
 0x5a5   :  { %2115 = shalt.err (!%p2112_p1)
}
 0x5a6   :  { %s2142_s15 = smov 128   ;;  %s2143_s16 = smov 8  }
 0x5a7   :  { %1519 = dma.vmem_to_hbm [thread:$0]  %s1514_s7, 1024, %s2551_s8, [#allocation4], %s2142_s15, %s2142_s15, %s2143_s16  }
 0x5a8   :  { %2130 = dma.done.wait [#allocation4], 1024  }
 0x5a9   :  { %2131 = vsyncadd [#allocation4], 4294966272 }
 0x5aa   :  { %1523 = vsyncpa [#allocation3], 1 }
 0x5ab   :  { %1524 = vsyncpa [#allocation6], 1 }
 0x5ac   :  { %1525 = vsyncpa [#allocation9], 1 }
 0x5ad   :  { %1526 = vsyncpa [#allocation4], 1 }

</bundles_post_ra>
